<compile_context>
chip_gen: v6e
topology: v6e:2x2x1
jax: 0.10.0
libtpu: 0.0.40
codegen_flags: <defaults>
</compile_context>

<pallas_src>
import functools

import jax
import jax.numpy as jnp
from jax.experimental import pallas as pl
from jax.experimental.pallas import tpu as pltpu


def _round_up(x: int, m: int) -> int:
    return ((x + m - 1) // m) * m


# -----------------------------------------------------------------------------
# Fused Linear + LayerNorm kernel (ImageProjection.forward hot path)
# -----------------------------------------------------------------------------
def _imageproj_kernel(x_ref, w_ref, p_ref, o_ref, *, eps):
    # x_ref: (tm, Din) bf16      w_ref: (Din, Dout) bf16
    # p_ref: (3, Dout) f32 rows = [bias, gamma, beta]
    # o_ref: (tm, Dout)
    # Linear on the MXU with f32 accumulation.
    y = jnp.dot(x_ref[...], w_ref[...], preferred_element_type=jnp.float32)
    y = y + p_ref[0:1, :]                                   # + bias

    # LayerNorm over the feature axis -- single-pass moments in f32.
    inv_n = 1.0 / y.shape[-1]
    mean = jnp.sum(y, axis=-1, keepdims=True) * inv_n
    mean_sq = jnp.sum(y * y, axis=-1, keepdims=True) * inv_n
    var = jnp.maximum(mean_sq - mean * mean, 0.0)
    y_norm = (y - mean) * jax.lax.rsqrt(var + eps)

    o_ref[...] = (y_norm * p_ref[1:2, :] + p_ref[2:3, :]).astype(o_ref.dtype)


def image_projection_pallas(x, w_bf16, affine, *, eps=1e-5, out_dtype=jnp.float32):
    """x: (M, Din) -> (M, Dout). Fused Linear + LayerNorm.

    x is cast to bf16 for the MXU; w_bf16 is the (Din, Dout) bf16 weight;
    affine is the (3, Dout) f32 stack [bias, gamma, beta].
    """
    M, Din = x.shape
    Dout = w_bf16.shape[1]

    x = x.astype(jnp.bfloat16)

    # One big row tile (single grid step) for small M; 256-row tiles otherwise.
    tm = min(_round_up(max(M, 1), 8), 256)
    m_padded = _round_up(M, tm)
    if m_padded != M:
        x = jnp.pad(x, ((0, m_padded - M), (0, 0)))

    kernel = functools.partial(_imageproj_kernel, eps=eps)
    out = pl.pallas_call(
        kernel,
        out_shape=jax.ShapeDtypeStruct((m_padded, Dout), out_dtype),
        grid_spec=pltpu.PrefetchScalarGridSpec(
            num_scalar_prefetch=0,
            grid=(m_padded // tm,),
            in_specs=[
                pl.BlockSpec((tm, Din), lambda i: (i, 0)),       # activations (pipelined)
                pl.BlockSpec((Din, Dout), lambda i: (0, 0)),     # weight (resident)
                pl.BlockSpec((3, Dout), lambda i: (0, 0)),       # bias/gamma/beta (resident)
            ],
            out_specs=pl.BlockSpec((tm, Dout), lambda i: (i, 0)),
        ),
        compiler_params=pltpu.CompilerParams(
            dimension_semantics=("parallel",),
            vmem_limit_bytes=32 * 1024 * 1024,   # tiny kernel; fits on v5e/v6e/v7x
        ),
    )(x, w_bf16, affine)
    return out[:M]


# -----------------------------------------------------------------------------
# ImageProjection.forward
# -----------------------------------------------------------------------------
def image_projection_forward(image_embeds, packed_params, *, cross_attention_dim, eps=1e-5):
    """Matches the PyTorch module:
        y = Linear(image_embeds); y = y.reshape(B, -1, D); y = LayerNorm(y)
    (LayerNorm is over the last axis, so fusing it before the reshape is exact.)
    """
    batch_size = image_embeds.shape[0]
    din = image_embeds.shape[-1]
    x2d = image_embeds.reshape(-1, din)
    y = image_projection_pallas(
        x2d, packed_params["w"], packed_params["affine"], eps=eps
    )
    return y.reshape(batch_size, -1, cross_attention_dim)


# -----------------------------------------------------------------------------
# Parameter init (nn.Linear + nn.LayerNorm defaults) and kernel packing
# -----------------------------------------------------------------------------
def init_params(key, din, dout):
    kw, kb = jax.random.split(key)
    bound = 1.0 / (din ** 0.5)
    w = jax.random.uniform(kw, (din, dout), jnp.float32, -bound, bound)   # (in, out)
    b = jax.random.uniform(kb, (dout,), jnp.float32, -bound, bound)
    gamma = jnp.ones((dout,), jnp.float32)
    beta = jnp.zeros((dout,), jnp.float32)
    return {"w": w, "b": b, "gamma": gamma, "beta": beta}


def pack_params(params):
    return {
        "w": params["w"].astype(jnp.bfloat16),                                   # MXU weight
        "affine": jnp.stack([params["b"], params["gamma"], params["beta"]], 0),  # (3, Dout) f32
    }


if __name__ == "__main__":
    # Module defaults: image_embed_dim = cross_attention_dim = 768.
    # batch 12 deliberately not a multiple of 8 to exercise the row-padding path.
    B = 12
    DIN = 768        # image_embed_dim
    DOUT = 768       # cross_attention_dim

    key = jax.random.PRNGKey(0)
    kx, kp = jax.random.split(key)
    image_embeds = jax.random.normal(kx, (B, DIN), jnp.float32)
    params = init_params(kp, DIN, DOUT)
    packed = pack_params(params)

    out = image_projection_forward(image_embeds, packed, cross_attention_dim=DOUT)
    jax.block_until_ready(out)
    assert out.shape == (B, 1, DOUT), out.shape

    # Reference: f32 math on the same bf16-rounded operands the kernel consumes.
    x_bf = image_embeds.astype(jnp.bfloat16).astype(jnp.float32)
    w_bf = params["w"].astype(jnp.bfloat16).astype(jnp.float32)
    y = x_bf @ w_bf + params["b"]
    mu = jnp.mean(y, axis=-1, keepdims=True)
    var = jnp.mean((y - mu) ** 2, axis=-1, keepdims=True)
    y_ref = (y - mu) * jax.lax.rsqrt(var + 1e-5) * params["gamma"] + params["beta"]
    y_ref = y_ref.reshape(B, 1, DOUT)

    assert jnp.allclose(out, y_ref, atol=2e-2, rtol=2e-2), (
        float(jnp.max(jnp.abs(out - y_ref)))
    )

    print("KERNEL_OK")
</pallas_src>

<mosaic_0001>
module attributes {stable_mosaic.version = 11 : i64} {
  func.func @_imageproj_kernel(%arg0: i32, %arg1: memref<16x768xbf16, #tpu.memory_space<vmem>>, %arg2: memref<768x768xbf16, #tpu.memory_space<vmem>>, %arg3: memref<3x768xf32, #tpu.memory_space<vmem>>, %arg4: memref<16x768xf32, #tpu.memory_space<vmem>>) attributes {dimension_semantics = [#tpu.dimension_semantics<parallel>], iteration_bounds = array<i64: 1>, scalar_prefetch = 0 : i64, scratch_operands = 0 : i64, tpu.core_type = #tpu.core_type<tc>, window_params = [{transform_indices = @transform_0, window_bounds = array<i64: 16, 768>}, {pipeline_mode = #tpu.pipeline_mode<synchronous>, transform_indices = @transform_1, window_bounds = array<i64: 768, 768>}, {pipeline_mode = #tpu.pipeline_mode<synchronous>, transform_indices = @transform_2, window_bounds = array<i64: 3, 768>}, {transform_indices = @transform_3, window_bounds = array<i64: 16, 768>}]} {
    %c0 = arith.constant 0 : index
    %c0_0 = arith.constant 0 : index
    %0 = vector.load %arg1[%c0, %c0_0] : memref<16x768xbf16, #tpu.memory_space<vmem>>, vector<16x768xbf16>
    %c0_1 = arith.constant 0 : index
    %c0_2 = arith.constant 0 : index
    %1 = vector.load %arg2[%c0_1, %c0_2] : memref<768x768xbf16, #tpu.memory_space<vmem>>, vector<768x768xbf16>
    %cst = arith.constant dense<0.000000e+00> : vector<16x768xf32>
    %2 = tpu.matmul %0, %1, %cst {dimension_numbers = #tpu.dot_dimension_numbers<[1], [0], [0], [1], [0, 0, 1, 1], [], []>} : vector<16x768xbf16>, vector<768x768xbf16>, vector<16x768xf32> -> vector<16x768xf32>
    %c0_3 = arith.constant 0 : index
    %c0_4 = arith.constant 0 : index
    %3 = vector.load %arg3[%c0_3, %c0_4] : memref<3x768xf32, #tpu.memory_space<vmem>>, vector<1x768xf32>
    %4 = vector.broadcast %3 : vector<1x768xf32> to vector<16x768xf32>
    %5 = arith.addf %2, %4 : vector<16x768xf32>
    %cst_5 = arith.constant dense<0.000000e+00> : vector<16xf32>
    %6 = vector.multi_reduction <add>, %5, %cst_5 [1] : vector<16x768xf32> to vector<16xf32>
    %7 = vector.shape_cast %6 : vector<16xf32> to vector<16x1xf32>
    %cst_6 = arith.constant 0.00130208337 : f32
    %8 = vector.broadcast %cst_6 : f32 to vector<16x1xf32>
    %9 = arith.mulf %7, %8 : vector<16x1xf32>
    %10 = arith.mulf %5, %5 : vector<16x768xf32>
    %cst_7 = arith.constant dense<0.000000e+00> : vector<16xf32>
    %11 = vector.multi_reduction <add>, %10, %cst_7 [1] : vector<16x768xf32> to vector<16xf32>
    %12 = vector.shape_cast %11 : vector<16xf32> to vector<16x1xf32>
    %cst_8 = arith.constant 0.00130208337 : f32
    %13 = vector.broadcast %cst_8 : f32 to vector<16x1xf32>
    %14 = arith.mulf %12, %13 : vector<16x1xf32>
    %15 = arith.mulf %9, %9 : vector<16x1xf32>
    %16 = arith.subf %14, %15 : vector<16x1xf32>
    %cst_9 = arith.constant 0.000000e+00 : f32
    %17 = vector.broadcast %cst_9 : f32 to vector<16x1xf32>
    %18 = arith.maximumf %16, %17 : vector<16x1xf32>
    %19 = vector.broadcast %9 : vector<16x1xf32> to vector<16x768xf32>
    %20 = arith.subf %5, %19 : vector<16x768xf32>
    %cst_10 = arith.constant 9.99999974E-6 : f32
    %21 = vector.broadcast %cst_10 : f32 to vector<16x1xf32>
    %22 = arith.addf %18, %21 : vector<16x1xf32>
    %23 = math.rsqrt %22 : vector<16x1xf32>
    %24 = vector.broadcast %23 : vector<16x1xf32> to vector<16x768xf32>
    %25 = arith.mulf %20, %24 : vector<16x768xf32>
    %c1 = arith.constant 1 : index
    %c0_11 = arith.constant 0 : index
    %26 = vector.load %arg3[%c1, %c0_11] : memref<3x768xf32, #tpu.memory_space<vmem>>, vector<1x768xf32>
    %27 = vector.broadcast %26 : vector<1x768xf32> to vector<16x768xf32>
    %28 = arith.mulf %25, %27 : vector<16x768xf32>
    %c2 = arith.constant 2 : index
    %c0_12 = arith.constant 0 : index
    %29 = vector.load %arg3[%c2, %c0_12] : memref<3x768xf32, #tpu.memory_space<vmem>>, vector<1x768xf32>
    %30 = vector.broadcast %29 : vector<1x768xf32> to vector<16x768xf32>
    %31 = arith.addf %28, %30 : vector<16x768xf32>
    %c0_13 = arith.constant 0 : index
    %c0_14 = arith.constant 0 : index
    %32 = vector.load %arg4[%c0_13, %c0_14] : memref<16x768xf32, #tpu.memory_space<vmem>>, vector<16x768xf32>
    tpu.vector_store %arg4[%c0_13, %c0_14], %31 {strides = array<i32>} : memref<16x768xf32, #tpu.memory_space<vmem>>, vector<16x768xf32>,
    return
  }
  func.func @transform_0(%arg0: i32) -> (i32, i32) {
    %c0_i32 = arith.constant 0 : i32
    %c0_i32_0 = arith.constant 0 : i32
    return %arg0, %c0_i32 : i32, i32
  }
  func.func @transform_1(%arg0: i32) -> (i32, i32) {
    %c0_i32 = arith.constant 0 : i32
    %c0_i32_0 = arith.constant 0 : i32
    %c0_i32_1 = arith.constant 0 : i32
    return %c0_i32, %c0_i32_0 : i32, i32
  }
  func.func @transform_2(%arg0: i32) -> (i32, i32) {
    %c0_i32 = arith.constant 0 : i32
    %c0_i32_0 = arith.constant 0 : i32
    %c0_i32_1 = arith.constant 0 : i32
    return %c0_i32, %c0_i32_0 : i32, i32
  }
  func.func @transform_3(%arg0: i32) -> (i32, i32) {
    %c0_i32 = arith.constant 0 : i32
    %c0_i32_0 = arith.constant 0 : i32
    return %arg0, %c0_i32 : i32, i32
  }
}

</mosaic_0001>

<bundles_post_ra>
// kernel: tpu_custom_call.1
= control target key start
LH: loop header
LB: loop body
LE: loop exit
PB: predicated region body
PF: predicated region fallthrough
CT: control target
= control target key end

     0   :  { %8 = vsyncpa [#allocation3], 0  ;;  %s3440_s0 = inlined_call_operand.hbm [shape: bf16[16,768], index: 0, kind: input, shape index: {}]   ;;  %s3441_s1 = inlined_call_operand.hbm [shape: bf16[768,768], index: 1, kind: input, shape index: {}]   ;;  %s3442_s2 = inlined_call_operand.hbm [shape: f32[3,768], index: 2, kind: input, shape index: {}]   ;;  %s3443_s3 = inlined_call_operand.hbm [shape: f32[16,768], index: 3, kind: output, shape index: {}]  }
   0x1   :  { %9 = vsyncpa [#allocation6], 0 }
   0x2   :  { %10 = vsyncpa [#allocation4], 0  ;;  %s3272_s12 = smov [#allocation5]   ;;  %s3273_s14 = smov [#allocation2]  }
   0x3   :  { %s28_s13 = sshll.u32 %s3272_s12, 4  ;;  %s16_s15 = sshll.u32 %s3273_s14, 4  ;;  %s29_s13 = int_to_ptr.vmem [resolvable:$true] %s28_s13  ;;  %s17_s15 = int_to_ptr.vmem [resolvable:$true] %s16_s15 }
   0x4   :  { %s3194_s16 = scalar_lea.vmem %s29_s13, 36864  ;;  %p3199_p1 = scmp.lt.s32.totalorder %s29_s13, %s29_s13 }
   0x5   :  { %p3195_p0 = scmp.ne.s32.totalorder %s29_s13, %s3194_s16  ;;  %p3200_p2 = scmp.lt.s32.totalorder %s3194_s16, %s3194_s16 }
   0x7   :  { %p3201_p3 = por %p3200_p2, %p3199_p1 }
   0x9   :  { %p3202_p4 = pnand %p3201_p3, %p3195_p0 }
   0xb   :  { %3205 = shalt.err (!%p3202_p4)
}
   0xc   :  { %s3274_s17 = smov 384   ;;  %s3275_s18 = smov 24  }
   0xd   :  { %34 = dma.hbm_to_vmem [thread:$0]  %s3441_s1, 36864, %s29_s13, [#allocation6], %s3274_s17, %s3274_s17, %s3275_s18  }
   0xe   :  { %s3214_s21 = scalar_lea.vmem %s17_s15, 768  ;;  %p3219_p6 = scmp.lt.s32.totalorder %s17_s15, %s17_s15 }
   0xf   :  { %p3215_p5 = scmp.ne.s32.totalorder %s17_s15, %s3214_s21  ;;  %p3220_p7 = scmp.lt.s32.totalorder %s3214_s21, %s3214_s21 }
  0x11   :  { %p3221_p8 = por %p3220_p7, %p3219_p6 }
  0x13   :  { %p3222_p9 = pnand %p3221_p8, %p3215_p5 }
  0x15   :  { %3225 = shalt.err (!%p3222_p9)
}
  0x16   :  { %22 = dma.hbm_to_vmem [thread:$0]  %s3440_s0, 768, %s17_s15, [#allocation3], %s3274_s17, %s3274_s17, %s3275_s18  }
  0x17   :  { %s3276_s24 = smov [#allocation7]  }
  0x18   :  { %s41_s25 = sshll.u32 %s3276_s24, 4  ;;  %s42_s25 = int_to_ptr.vmem [resolvable:$true] %s41_s25 }
  0x19   :  { %s3234_s26 = scalar_lea.vmem %s42_s25, 384  ;;  %p3239_p11 = scmp.lt.s32.totalorder %s42_s25, %s42_s25 }
  0x1a   :  { %p3235_p10 = scmp.ne.s32.totalorder %s42_s25, %s3234_s26  ;;  %p3240_p12 = scmp.lt.s32.totalorder %s3234_s26, %s3234_s26 }
  0x1c   :  { %p3241_p13 = por %p3240_p12, %p3239_p11 }
  0x1e   :  { %p3242_p0 = pnand %p3241_p13, %p3235_p10 }
  0x20   :  { %3245 = shalt.err (!%p3242_p0)
}
  0x21   :  { %44 = dma.hbm_to_vmem [thread:$0]  %s3442_s2, 384, %s42_s25, [#allocation6]  }
  0x22   :  { %3266 = dma.done.wait [#allocation3], 768  }
  0x23   :  { %3267 = vsyncadd [#allocation3], 4294966528 }
  0x24   :  { %3268 = dma.done.wait [#allocation6], 37248  }
  0x25   :  { %3269 = vsyncadd [#allocation6], 4294930048  ;;  %v2737_v0 = vld [vmem:[#allocation5 + $0x154] ss:$24 sps:$4 sm:$0xff]   ;;  %v2739_v1 = vld [vmem:[#allocation5 + $0x150] ss:$24 sps:$4 sm:$0xff]  }
  0x26   :  { %1850 = vmatprep.subr.bf16.mxu0 %v2737_v0  ;;  %v2740_v2 = vld [vmem:[#allocation5 + $0x454] ss:$24 sps:$4 sm:$0xff]   ;;  %v2742_v3 = vld [vmem:[#allocation5 + $0x450] ss:$24 sps:$4 sm:$0xff]   ;;  %v2743_v4 = vld [vmem:[#allocation5 + $0x124] ss:$24 sps:$4 sm:$0xff]  }
  0x27   :  { %1851 = vmatpush1.bf16.msra.mxu0 %v2739_v1  ;;  %v2745_v5 = vld [vmem:[#allocation5 + $0x120] ss:$24 sps:$4 sm:$0xff]   ;;  %1893 = vmatprep.subr.bf16.mxu1 %v2740_v2  ;;  %v2746_v6 = vld [vmem:[#allocation5 + $0x424] ss:$24 sps:$4 sm:$0xff]   ;;  %v2749_v8 = vld [vmem:[#allocation5 + $0xf4] ss:$24 sps:$4 sm:$0xff]  }
  0x28   :  { %1894 = vmatpush1.bf16.msra.mxu1 %v2742_v3  ;;  %1852 = vmatprep.subr.bf16.mxu0 %v2743_v4  ;;  %v2748_v7 = vld [vmem:[#allocation5 + $0x420] ss:$24 sps:$4 sm:$0xff]   ;;  %v2751_v9 = vld [vmem:[#allocation5 + $0xf0] ss:$24 sps:$4 sm:$0xff]   ;;  %v2752_v10 = vld [vmem:[#allocation5 + $0x3f4] ss:$24 sps:$4 sm:$0xff]  }
  0x29   :  { %1895 = vmatprep.subr.bf16.mxu1 %v2746_v6  ;;  %v2755_v11 = vld [vmem:[#allocation5 + $0xc4] ss:$24 sps:$4 sm:$0xff]   ;;  %v2754_v12 = vld [vmem:[#allocation5 + $0x3f0] ss:$24 sps:$4 sm:$0xff]   ;;  %v2757_v14 = vld [vmem:[#allocation5 + $0xc0] ss:$24 sps:$4 sm:$0xff]  }
  0x2a   :  { %v2758_v13 = vld [vmem:[#allocation5 + $0x3c4] ss:$24 sps:$4 sm:$0xff]   ;;  %v2761_v15 = vld [vmem:[#allocation5 + $0x94] ss:$24 sps:$4 sm:$0xff]   ;;  %v2760_v16 = vld [vmem:[#allocation5 + $0x3c0] ss:$24 sps:$4 sm:$0xff]  }
  0x2b   :  { %1853 = vmatpush1.bf16.msra.mxu0 %v2745_v5  ;;  %v2764_v17 = vld [vmem:[#allocation5 + $0x394] ss:$24 sps:$4 sm:$0xff]   ;;  %v2763_v18 = vld [vmem:[#allocation5 + $0x90] ss:$24 sps:$4 sm:$0xff]   ;;  %v2767_v19 = vld [vmem:[#allocation5 + $0x64] ss:$24 sps:$4 sm:$0xff]  }
  0x2c   :  { %1854 = vmatprep.subr.bf16.mxu0 %v2749_v8  ;;  %1896 = vmatpush1.bf16.msra.mxu1 %v2748_v7  ;;  %v2766_v20 = vld [vmem:[#allocation5 + $0x390] ss:$24 sps:$4 sm:$0xff]   ;;  %v2770_v21 = vld [vmem:[#allocation5 + $0x364] ss:$24 sps:$4 sm:$0xff]   ;;  %v2769_v22 = vld [vmem:[#allocation5 + $0x60] ss:$24 sps:$4 sm:$0xff]  }
  0x2d   :  { %1897 = vmatprep.subr.bf16.mxu1 %v2752_v10  ;;  %v2773_v23 = vld [vmem:[#allocation5 + $0x34] ss:$24 sps:$4 sm:$0xff]   ;;  %v2772_v24 = vld [vmem:[#allocation5 + $0x360] ss:$24 sps:$4 sm:$0xff]   ;;  %v2775_v26 = vld [vmem:[#allocation5 + $0x30] ss:$24 sps:$4 sm:$0xff]  }
  0x2e   :  { %v2776_v25 = vld [vmem:[#allocation5 + $0x334] ss:$24 sps:$4 sm:$0xff]   ;;  %v2779_v27 = vld [vmem:[#allocation5 + $0x4] ss:$24 sps:$4 sm:$0xff]   ;;  %v2778_v28 = vld [vmem:[#allocation5 + $0x330] ss:$24 sps:$4 sm:$0xff]  }
  0x2f   :  { %1855 = vmatpush1.bf16.msra.mxu0 %v2751_v9  ;;  %v2782_v29 = vld [vmem:[#allocation5 + $0x304] ss:$24 sps:$4 sm:$0xff]   ;;  %v2781_v30 = vld [vmem:[#allocation5] ss:$24 sps:$4 sm:$0xff]   ;;  %v2785_v31 = vld [vmem:[#allocation5 + $0x2d4] ss:$24 sps:$4 sm:$0xff]  }
  0x30   :  { %1856 = vmatprep.subr.bf16.mxu0 %v2755_v11  ;;  %1898 = vmatpush1.bf16.msra.mxu1 %v2754_v12  ;;  %v2784_v32 = vld [vmem:[#allocation5 + $0x300] ss:$24 sps:$4 sm:$0xff]   ;;  %v2788_v33 = vld [vmem:[#allocation5 + $0x5d4] ss:$24 sps:$4 sm:$0xff]   ;;  %v2787_v34 = vld [vmem:[#allocation5 + $0x2d0] ss:$24 sps:$4 sm:$0xff]  }
  0x31   :  { %1899 = vmatprep.subr.bf16.mxu1 %v2758_v13  ;;  %v2791_v35 = vld [vmem:[#allocation5 + $0x2a4] ss:$24 sps:$4 sm:$0xff]   ;;  %v2790_v36 = vld [vmem:[#allocation5 + $0x5d0] ss:$24 sps:$4 sm:$0xff]   ;;  %v2793_v38 = vld [vmem:[#allocation5 + $0x2a0] ss:$24 sps:$4 sm:$0xff]  }
  0x32   :  { %v2794_v37 = vld [vmem:[#allocation5 + $0x5a4] ss:$24 sps:$4 sm:$0xff]   ;;  %v2797_v39 = vld [vmem:[#allocation5 + $0x274] ss:$24 sps:$4 sm:$0xff]   ;;  %v2796_v40 = vld [vmem:[#allocation5 + $0x5a0] ss:$24 sps:$4 sm:$0xff]  }
  0x33   :  { %1857 = vmatpush1.bf16.msra.mxu0 %v2757_v14  ;;  %v2800_v41 = vld [vmem:[#allocation5 + $0x574] ss:$24 sps:$4 sm:$0xff]   ;;  %v2799_v42 = vld [vmem:[#allocation5 + $0x270] ss:$24 sps:$4 sm:$0xff]   ;;  %v2803_v43 = vld [vmem:[#allocation5 + $0x244] ss:$24 sps:$4 sm:$0xff]  }
  0x34   :  { %1858 = vmatprep.subr.bf16.mxu0 %v2761_v15  ;;  %1900 = vmatpush1.bf16.msra.mxu1 %v2760_v16  ;;  %v2802_v44 = vld [vmem:[#allocation5 + $0x570] ss:$24 sps:$4 sm:$0xff]   ;;  %v2806_v45 = vld [vmem:[#allocation5 + $0x544] ss:$24 sps:$4 sm:$0xff]   ;;  %v2805_v46 = vld [vmem:[#allocation5 + $0x240] ss:$24 sps:$4 sm:$0xff]  }
  0x35   :  { %1901 = vmatprep.subr.bf16.mxu1 %v2764_v17  ;;  %v2832_v47 = vld [vmem:[#allocation2 + $0x4] ss:$24 sps:$4 sm:$0xff]   ;;  %v2808_v49 = vld [vmem:[#allocation5 + $0x540] ss:$24 sps:$4 sm:$0xff]   ;;  %v2811_v52 = vld [vmem:[#allocation5 + $0x210] ss:$24 sps:$4 sm:$0xff]  }
  0x36   :  { %v2809_v48 = vld [vmem:[#allocation5 + $0x214] ss:$24 sps:$4 sm:$0xff]   ;;  %1882 = vmatprep.mubr.bf16.mxu0 %v2832_v47  ;;  %v2815_v53 = vld [vmem:[#allocation5 + $0x1e4] ss:$24 sps:$4 sm:$0xff]   ;;  %v2814_v54 = vld [vmem:[#allocation5 + $0x510] ss:$24 sps:$4 sm:$0xff]  }
  0x37   :  { %1859 = vmatpush1.bf16.msra.mxu0 %v2763_v18  ;;  %v2812_v50 = vld [vmem:[#allocation5 + $0x514] ss:$24 sps:$4 sm:$0xff]   ;;  %v2818_v55 = vld [vmem:[#allocation5 + $0x4e4] ss:$24 sps:$4 sm:$0xff]   ;;  %v2817_v56 = vld [vmem:[#allocation5 + $0x1e0] ss:$24 sps:$4 sm:$0xff]  }
  0x38   :  { %1860 = vmatprep.subr.bf16.mxu0 %v2767_v19  ;;  %1902 = vmatpush1.bf16.msra.mxu1 %v2766_v20  ;;  %v3309_v51 = vld [vmem:[#allocation2 + $0xc] ss:$24 sps:$4 sm:$0xff]   ;;  %v2820_v58 = vld [vmem:[#allocation5 + $0x4e0] ss:$24 sps:$4 sm:$0xff]   ;;  %v2823_v60 = vld [vmem:[#allocation5 + $0x1b0] ss:$24 sps:$4 sm:$0xff]  }
  0x39   :  { %1903 = vmatprep.subr.bf16.mxu1 %v2770_v21  ;;  %1925 = vmatprep.mubr.bf16.mxu1 %v3309_v51  ;;  %v2821_v57 = vld [vmem:[#allocation5 + $0x1b4] ss:$24 sps:$4 sm:$0xff]   ;;  %v2827_v61 = vld [vmem:[#allocation5 + $0x184] ss:$24 sps:$4 sm:$0xff]   ;;  %v2826_v62 = vld [vmem:[#allocation5 + $0x4b0] ss:$24 sps:$4 sm:$0xff]  }
  0x3a   :  { %v2824_v59 = vld [vmem:[#allocation5 + $0x4b4] ss:$24 sps:$4 sm:$0xff]   ;;  %v2830_v63 = vld [vmem:[#allocation5 + $0x484] ss:$24 sps:$4 sm:$0xff]   ;;  %v2829_v0 = vld [vmem:[#allocation5 + $0x180] ss:$24 sps:$4 sm:$0xff]  }
  0x3b   :  { %1861 = vmatpush1.bf16.msra.mxu0 %v2769_v22  ;;  %v2838_v1 = vld [vmem:[#allocation5 + $0x754] ss:$24 sps:$4 sm:$0xff]   ;;  %v2834_v2 = vld [vmem:[#allocation5 + $0x480] ss:$24 sps:$4 sm:$0xff]   ;;  %v3312_v3 = vld [vmem:[#allocation2] ss:$24 sps:$4 sm:$0xff]  }
  0x3c   :  { %1862 = vmatprep.subr.bf16.mxu0 %v2773_v23  ;;  %1904 = vmatpush1.bf16.msra.mxu1 %v2772_v24  ;;  %v2844_v4 = vld [vmem:[#allocation5 + $0x15c] ss:$24 sps:$4 sm:$0xff]   ;;  %v2836_v5 = vld [vmem:[#allocation5 + $0x750] ss:$24 sps:$4 sm:$0xff]   ;;  %v2850_v9 = vld [vmem:[#allocation5 + $0x12c] ss:$24 sps:$4 sm:$0xff]  }
  0x3d   :  { %1905 = vmatprep.subr.bf16.mxu1 %v2776_v25  ;;  %v3314_v6 = vld [vmem:[#allocation2 + $0x8] ss:$24 sps:$4 sm:$0xff]   ;;  %v2847_v7 = vld [vmem:[#allocation5 + $0x724] ss:$24 sps:$4 sm:$0xff]   ;;  %v2853_v11 = vld [vmem:[#allocation5 + $0x6f4] ss:$24 sps:$4 sm:$0xff]  }
  0x3e   :  { %v2842_v8 = vld [vmem:[#allocation5 + $0x158] ss:$24 sps:$4 sm:$0xff]   ;;  %v2848_v12 = vld [vmem:[#allocation5 + $0x128] ss:$24 sps:$4 sm:$0xff]   ;;  %v2856_v13 = vld [vmem:[#allocation5 + $0xfc] ss:$24 sps:$4 sm:$0xff]  }
  0x3f   :  { %1863 = vmatpush1.bf16.msra.mxu0 %v2775_v26  ;;  %v2845_v10 = vld [vmem:[#allocation5 + $0x720] ss:$24 sps:$4 sm:$0xff]   ;;  %v2851_v14 = vld [vmem:[#allocation5 + $0x6f0] ss:$24 sps:$4 sm:$0xff]   ;;  %v2859_v15 = vld [vmem:[#allocation5 + $0x6c4] ss:$24 sps:$4 sm:$0xff]  }
  0x40   :  { %1864 = vmatprep.subr.bf16.mxu0 %v2779_v27  ;;  %1906 = vmatpush1.bf16.msra.mxu1 %v2778_v28  ;;  %v2854_v16 = vld [vmem:[#allocation5 + $0xf8] ss:$24 sps:$4 sm:$0xff]   ;;  %v2862_v17 = vld [vmem:[#allocation5 + $0xcc] ss:$24 sps:$4 sm:$0xff]   ;;  %v2860_v20 = vld [vmem:[#allocation5 + $0xc8] ss:$24 sps:$4 sm:$0xff]  }
  0x41   :  { %1907 = vmatprep.subr.bf16.mxu1 %v2782_v29  ;;  %v2857_v18 = vld [vmem:[#allocation5 + $0x6c0] ss:$24 sps:$4 sm:$0xff]   ;;  %v2865_v19 = vld [vmem:[#allocation5 + $0x694] ss:$24 sps:$4 sm:$0xff]   ;;  %v2863_v22 = vld [vmem:[#allocation5 + $0x690] ss:$24 sps:$4 sm:$0xff]  }
  0x42   :  { %v2868_v21 = vld [vmem:[#allocation5 + $0x9c] ss:$24 sps:$4 sm:$0xff]   ;;  %v2866_v24 = vld [vmem:[#allocation5 + $0x98] ss:$24 sps:$4 sm:$0xff]   ;;  %v2874_v25 = vld [vmem:[#allocation5 + $0x6c] ss:$24 sps:$4 sm:$0xff]  }
  0x43   :  { %1865 = vmatpush1.bf16.msra.mxu0 %v2781_v30  ;;  %v2871_v23 = vld [vmem:[#allocation5 + $0x664] ss:$24 sps:$4 sm:$0xff]   ;;  %v2869_v26 = vld [vmem:[#allocation5 + $0x660] ss:$24 sps:$4 sm:$0xff]   ;;  %v2877_v27 = vld [vmem:[#allocation5 + $0x634] ss:$24 sps:$4 sm:$0xff]  }
  0x44   :  { %1866 = vmatprep.subr.bf16.mxu0 %v2785_v31  ;;  %1908 = vmatpush1.bf16.msra.mxu1 %v2784_v32  ;;  %v2872_v28 = vld [vmem:[#allocation5 + $0x68] ss:$24 sps:$4 sm:$0xff]   ;;  %v2880_v29 = vld [vmem:[#allocation5 + $0x3c] ss:$24 sps:$4 sm:$0xff]   ;;  %v2878_v31 = vld [vmem:[#allocation5 + $0x38] ss:$24 sps:$4 sm:$0xff]  }
  0x45   :  { %1909 = vmatprep.subr.bf16.mxu1 %v2788_v33  ;;  %v2875_v30 = vld [vmem:[#allocation5 + $0x630] ss:$24 sps:$4 sm:$0xff]   ;;  %v2883_v32 = vld [vmem:[#allocation5 + $0x604] ss:$24 sps:$4 sm:$0xff]   ;;  %s3277_s0 = smov [#allocation8]  }
  0x46   :  { %v3318_v33 = vld [vmem:[#allocation2 + $0x14] ss:$24 sps:$4 sm:$0xff]   ;;  %s2422_s2 = sshll.u32 %s3277_s0, 4  ;;  %s2423_s2 = int_to_ptr.vmem [resolvable:$true] %s2422_s2 }
  0x47   :  { %1867 = vmatpush2.bf16.msra.mxu0 %v2787_v34  ;;  %v2886_v34 = vld [vmem:[#allocation5 + $0xc] ss:$24 sps:$4 sm:$0xff]   ;;  %s3246_s28 = scalar_lea.vmem %s2423_s2, 1536  ;;  %p3251_p2 = scmp.lt.s32.totalorder %s2423_s2, %s2423_s2 }
  0x48   :  { %1868 = vmatprep.subr.bf16.mxu0 %v2791_v35  ;;  %1910 = vmatpush2.bf16.msra.mxu1 %v2790_v36  ;;  %v2881_v35 = vld [vmem:[#allocation5 + $0x600] ss:$24 sps:$4 sm:$0xff]   ;;  %v2889_v36 = vld [vmem:[#allocation5 + $0x8d4] ss:$24 sps:$4 sm:$0xff]   ;;  %p3247_p1 = scmp.ne.s32.totalorder %s2423_s2, %s3246_s28  ;;  %p3252_p3 = scmp.lt.s32.totalorder %s3246_s28, %s3246_s28 }
  0x49   :  { %1911 = vmatprep.subr.bf16.mxu1 %v2794_v37  ;;  %v2884_v37 = vld [vmem:[#allocation5 + $0x8] ss:$24 sps:$4 sm:$0xff]  }
  0x4a   :  { %p3253_p4 = por %p3252_p3, %p3251_p2 }
  0x4b   :  { %1869 = vmatpush2.bf16.msra.mxu0 %v2793_v38  ;;  %v2892_v38 = vld [vmem:[#allocation5 + $0x2dc] ss:$24 sps:$4 sm:$0xff]  }
  0x4c   :  { %1870 = vmatprep.subr.bf16.mxu0 %v2797_v39  ;;  %1912 = vmatpush2.bf16.msra.mxu1 %v2796_v40  ;;  %v2887_v39 = vld [vmem:[#allocation5 + $0x8d0] ss:$24 sps:$4 sm:$0xff]   ;;  %v2895_v40 = vld [vmem:[#allocation5 + $0x8a4] ss:$24 sps:$4 sm:$0xff]   ;;  %p3254_p5 = pnand %p3253_p4, %p3247_p1 }
  0x4d   :  { %1913 = vmatprep.subr.bf16.mxu1 %v2800_v41  ;;  %v2890_v41 = vld [vmem:[#allocation5 + $0x2d8] ss:$24 sps:$4 sm:$0xff]  }
  0x4f   :  { %1871 = vmatpush2.bf16.msra.mxu0 %v2799_v42  ;;  %v2898_v42 = vld [vmem:[#allocation5 + $0x2ac] ss:$24 sps:$4 sm:$0xff]  }
  0x50   :  { %1872 = vmatprep.subr.bf16.mxu0 %v2803_v43  ;;  %1914 = vmatpush2.bf16.msra.mxu1 %v2802_v44  ;;  %v2893_v43 = vld [vmem:[#allocation5 + $0x8a0] ss:$24 sps:$4 sm:$0xff]   ;;  %v2901_v44 = vld [vmem:[#allocation5 + $0x874] ss:$24 sps:$4 sm:$0xff]  }
  0x51   :  { %1915 = vmatprep.subr.bf16.mxu1 %v2806_v45  ;;  %v2896_v45 = vld [vmem:[#allocation5 + $0x2a8] ss:$24 sps:$4 sm:$0xff]  }
  0x53   :  { %1873 = vmatpush2.bf16.msra.mxu0 %v2805_v46  ;;  %v2904_v46 = vld [vmem:[#allocation5 + $0x27c] ss:$24 sps:$4 sm:$0xff]  }
  0x54   :  { %1874 = vmatprep.subr.bf16.mxu0 %v2809_v48  ;;  %1916 = vmatpush2.bf16.msra.mxu1 %v2808_v49  ;;  %v2907_v48 = vld [vmem:[#allocation5 + $0x844] ss:$24 sps:$4 sm:$0xff]   ;;  %v2902_v49 = vld [vmem:[#allocation5 + $0x278] ss:$24 sps:$4 sm:$0xff]  }
  0x55   :  { %1917 = vmatprep.subr.bf16.mxu1 %v2812_v50  ;;  %v2910_v50 = vld [vmem:[#allocation5 + $0x24c] ss:$24 sps:$4 sm:$0xff]  }
  0x57   :  { %1875 = vmatpush2.bf16.msra.mxu0 %v2811_v52  ;;  %v2905_v52 = vld [vmem:[#allocation5 + $0x840] ss:$24 sps:$4 sm:$0xff]  }
  0x58   :  { %1876 = vmatprep.subr.bf16.mxu0 %v2815_v53  ;;  %1918 = vmatpush2.bf16.msra.mxu1 %v2814_v54  ;;  %v2913_v53 = vld [vmem:[#allocation5 + $0x814] ss:$24 sps:$4 sm:$0xff]   ;;  %v2908_v54 = vld [vmem:[#allocation5 + $0x248] ss:$24 sps:$4 sm:$0xff]  }
  0x59   :  { %1919 = vmatprep.subr.bf16.mxu1 %v2818_v55  ;;  %v2916_v55 = vld [vmem:[#allocation5 + $0x21c] ss:$24 sps:$4 sm:$0xff]  }
  0x5b   :  { %1877 = vmatpush2.bf16.msra.mxu0 %v2817_v56  ;;  %v2911_v56 = vld [vmem:[#allocation5 + $0x810] ss:$24 sps:$4 sm:$0xff]  }
  0x5c   :  { %1878 = vmatprep.subr.bf16.mxu0 %v2821_v57  ;;  %1920 = vmatpush2.bf16.msra.mxu1 %v2820_v58  ;;  %v2919_v57 = vld [vmem:[#allocation5 + $0x7e4] ss:$24 sps:$4 sm:$0xff]   ;;  %v2914_v58 = vld [vmem:[#allocation5 + $0x218] ss:$24 sps:$4 sm:$0xff]  }
  0x5d   :  { %1921 = vmatprep.subr.bf16.mxu1 %v2824_v59  ;;  %v2922_v59 = vld [vmem:[#allocation5 + $0x1ec] ss:$24 sps:$4 sm:$0xff]  }
  0x5f   :  { %1879 = vmatpush2.bf16.msra.mxu0 %v2823_v60  ;;  %v2917_v60 = vld [vmem:[#allocation5 + $0x7e0] ss:$24 sps:$4 sm:$0xff]  }
  0x60   :  { %1880 = vmatprep.subr.bf16.mxu0 %v2827_v61  ;;  %1922 = vmatpush2.bf16.msra.mxu1 %v2826_v62  ;;  %v2925_v61 = vld [vmem:[#allocation5 + $0x7b4] ss:$24 sps:$4 sm:$0xff]   ;;  %v2920_v62 = vld [vmem:[#allocation5 + $0x1e8] ss:$24 sps:$4 sm:$0xff]  }
  0x61   :  { %1923 = vmatprep.subr.bf16.mxu1 %v2830_v63  ;;  %v2928_v63 = vld [vmem:[#allocation5 + $0x1bc] ss:$24 sps:$4 sm:$0xff]  }
  0x63   :  { %1881 = vmatpush2.bf16.msra.mxu0 %v2829_v0  ;;  %v2923_v0 = vld [vmem:[#allocation5 + $0x7b0] ss:$24 sps:$4 sm:$0xff]  }
  0x64   :  { %1936 = vmatprep.subr.bf16.mxu0 %v2838_v1  ;;  %1924 = vmatpush2.bf16.msra.mxu1 %v2834_v2  ;;  %v2931_v1 = vld [vmem:[#allocation5 + $0x784] ss:$24 sps:$4 sm:$0xff]   ;;  %v2926_v2 = vld [vmem:[#allocation5 + $0x1b8] ss:$24 sps:$4 sm:$0xff]  }
  0x65   :  { %1979 = vmatprep.subr.bf16.mxu1 %v2844_v4  ;;  %v2934_v4 = vld [vmem:[#allocation5 + $0x18c] ss:$24 sps:$4 sm:$0xff]  }
  0x66   :  { %1883 = vmatmul.mubr.bf16.vlgmr.msra.gmra.mxu0 %v3312_v3 }
  0x67   :  { %1937 = vmatpush1.bf16.msra.mxu0 %v2836_v5  ;;  %1926 = vmatmul.mubr.bf16.vlgmr.msra.gmra.mxu1 %v3314_v6  ;;  %v2929_v5 = vld [vmem:[#allocation5 + $0x780] ss:$24 sps:$4 sm:$0xff]  }
  0x68   :  { %1938 = vmatprep.subr.bf16.mxu0 %v2847_v7  ;;  %1980 = vmatpush1.bf16.msra.mxu1 %v2842_v8  ;;  %v2940_v7 = vld [vmem:[#allocation5 + $0x45c] ss:$24 sps:$4 sm:$0xff]   ;;  %v2932_v8 = vld [vmem:[#allocation5 + $0x188] ss:$24 sps:$4 sm:$0xff]  }
  0x69   :  { %2011 = vmatprep.mubr.bf16.mxu1 %v2832_v47  ;;  %1981 = vmatprep.subr.bf16.mxu1 %v2850_v9  ;;  %v2899_v47 = vld [vmem:[#allocation5 + $0x870] ss:$24 sps:$4 sm:$0xff]   ;;  %v3321_v9 = vld [vmem:[#allocation2 + $0x10] ss:$24 sps:$4 sm:$0xff]  }
  0x6a   :  { %1968 = vmatprep.mubr.bf16.mxu0 %v3318_v33 }
  0x6b   :  { %1939 = vmatpush1.bf16.msra.mxu0 %v2845_v10  ;;  %v2943_v10 = vld [vmem:[#allocation5 + $0x75c] ss:$24 sps:$4 sm:$0xff]  }
  0x6c   :  { %1940 = vmatprep.subr.bf16.mxu0 %v2853_v11  ;;  %1982 = vmatpush1.bf16.msra.mxu1 %v2848_v12  ;;  %v2938_v11 = vld [vmem:[#allocation5 + $0x458] ss:$24 sps:$4 sm:$0xff]   ;;  %v2946_v12 = vld [vmem:[#allocation5 + $0x42c] ss:$24 sps:$4 sm:$0xff]  }
  0x6d   :  { %1983 = vmatprep.subr.bf16.mxu1 %v2856_v13  ;;  %v2941_v13 = vld [vmem:[#allocation5 + $0x758] ss:$24 sps:$4 sm:$0xff]  }
  0x6f   :  { %1941 = vmatpush1.bf16.msra.mxu0 %v2851_v14  ;;  %v2949_v14 = vld [vmem:[#allocation5 + $0x72c] ss:$24 sps:$4 sm:$0xff]  }
  0x70   :  { %1942 = vmatprep.subr.bf16.mxu0 %v2859_v15  ;;  %1984 = vmatpush1.bf16.msra.mxu1 %v2854_v16  ;;  %v2944_v15 = vld [vmem:[#allocation5 + $0x428] ss:$24 sps:$4 sm:$0xff]   ;;  %v2952_v16 = vld [vmem:[#allocation5 + $0x3fc] ss:$24 sps:$4 sm:$0xff]  }
  0x71   :  { %1985 = vmatprep.subr.bf16.mxu1 %v2862_v17  ;;  %v2947_v17 = vld [vmem:[#allocation5 + $0x728] ss:$24 sps:$4 sm:$0xff]  }
  0x73   :  { %1943 = vmatpush1.bf16.msra.mxu0 %v2857_v18  ;;  %v2955_v18 = vld [vmem:[#allocation5 + $0x6fc] ss:$24 sps:$4 sm:$0xff]  }
  0x74   :  { %1944 = vmatprep.subr.bf16.mxu0 %v2865_v19  ;;  %1986 = vmatpush1.bf16.msra.mxu1 %v2860_v20  ;;  %v2950_v19 = vld [vmem:[#allocation5 + $0x3f8] ss:$24 sps:$4 sm:$0xff]   ;;  %v2958_v20 = vld [vmem:[#allocation5 + $0x3cc] ss:$24 sps:$4 sm:$0xff]  }
  0x75   :  { %1987 = vmatprep.subr.bf16.mxu1 %v2868_v21  ;;  %v2953_v21 = vld [vmem:[#allocation5 + $0x6f8] ss:$24 sps:$4 sm:$0xff]  }
  0x77   :  { %1945 = vmatpush1.bf16.msra.mxu0 %v2863_v22  ;;  %v2961_v22 = vld [vmem:[#allocation5 + $0x6cc] ss:$24 sps:$4 sm:$0xff]  }
  0x78   :  { %1946 = vmatprep.subr.bf16.mxu0 %v2871_v23  ;;  %1988 = vmatpush1.bf16.msra.mxu1 %v2866_v24  ;;  %v2959_v23 = vld [vmem:[#allocation5 + $0x6c8] ss:$24 sps:$4 sm:$0xff]   ;;  %v2967_v24 = vld [vmem:[#allocation5 + $0x69c] ss:$24 sps:$4 sm:$0xff]  }
  0x79   :  { %1989 = vmatprep.subr.bf16.mxu1 %v2874_v25  ;;  %v2962_v25 = vld [vmem:[#allocation5 + $0x398] ss:$24 sps:$4 sm:$0xff]  }
  0x7b   :  { %1947 = vmatpush1.bf16.msra.mxu0 %v2869_v26  ;;  %v2970_v26 = vld [vmem:[#allocation5 + $0x36c] ss:$24 sps:$4 sm:$0xff]  }
  0x7c   :  { %1948 = vmatprep.subr.bf16.mxu0 %v2877_v27  ;;  %1990 = vmatpush1.bf16.msra.mxu1 %v2872_v28  ;;  %v2965_v27 = vld [vmem:[#allocation5 + $0x698] ss:$24 sps:$4 sm:$0xff]   ;;  %v2973_v28 = vld [vmem:[#allocation5 + $0x66c] ss:$24 sps:$4 sm:$0xff]  }
  0x7d   :  { %1991 = vmatprep.subr.bf16.mxu1 %v2880_v29  ;;  %v2968_v29 = vld [vmem:[#allocation5 + $0x368] ss:$24 sps:$4 sm:$0xff]  }
  0x7f   :  { %1949 = vmatpush1.bf16.msra.mxu0 %v2875_v30  ;;  %v2976_v30 = vld [vmem:[#allocation5 + $0x33c] ss:$24 sps:$4 sm:$0xff]  }
  0x80   :  { %1950 = vmatprep.subr.bf16.mxu0 %v2883_v32  ;;  %1992 = vmatpush1.bf16.msra.mxu1 %v2878_v31  ;;  %v2971_v31 = vld [vmem:[#allocation5 + $0x668] ss:$24 sps:$4 sm:$0xff]   ;;  %v2979_v32 = vld [vmem:[#allocation5 + $0x63c] ss:$24 sps:$4 sm:$0xff]  }
  0x81   :  { %1993 = vmatprep.subr.bf16.mxu1 %v2886_v34  ;;  %v2974_v34 = vld [vmem:[#allocation5 + $0x338] ss:$24 sps:$4 sm:$0xff]  }
  0x83   :  { %1951 = vmatpush1.bf16.msra.mxu0 %v2881_v35  ;;  %v2982_v35 = vld [vmem:[#allocation5 + $0x30c] ss:$24 sps:$4 sm:$0xff]  }
  0x84   :  { %1952 = vmatprep.subr.bf16.mxu0 %v2889_v36  ;;  %1994 = vmatpush1.bf16.msra.mxu1 %v2884_v37  ;;  %v2977_v36 = vld [vmem:[#allocation5 + $0x638] ss:$24 sps:$4 sm:$0xff]   ;;  %v2985_v37 = vld [vmem:[#allocation5 + $0x60c] ss:$24 sps:$4 sm:$0xff]  }
  0x85   :  { %1995 = vmatprep.subr.bf16.mxu1 %v2892_v38  ;;  %v2980_v38 = vld [vmem:[#allocation5 + $0x308] ss:$24 sps:$4 sm:$0xff]  }
  0x87   :  { %1953 = vmatpush2.bf16.msra.mxu0 %v2887_v39  ;;  %v2988_v39 = vld [vmem:[#allocation5 + $0x5dc] ss:$24 sps:$4 sm:$0xff]  }
  0x88   :  { %1954 = vmatprep.subr.bf16.mxu0 %v2895_v40  ;;  %1996 = vmatpush2.bf16.msra.mxu1 %v2890_v41  ;;  %v2983_v40 = vld [vmem:[#allocation5 + $0x608] ss:$24 sps:$4 sm:$0xff]   ;;  %v2991_v41 = vld [vmem:[#allocation5 + $0x8dc] ss:$24 sps:$4 sm:$0xff]  }
  0x89   :  { %1997 = vmatprep.subr.bf16.mxu1 %v2898_v42  ;;  %v2986_v42 = vld [vmem:[#allocation5 + $0x5d8] ss:$24 sps:$4 sm:$0xff]  }
  0x8b   :  { %1955 = vmatpush2.bf16.msra.mxu0 %v2893_v43  ;;  %v2994_v43 = vld [vmem:[#allocation5 + $0x5ac] ss:$24 sps:$4 sm:$0xff]  }
  0x8c   :  { %1956 = vmatprep.subr.bf16.mxu0 %v2901_v44  ;;  %1998 = vmatpush2.bf16.msra.mxu1 %v2896_v45  ;;  %v2989_v44 = vld [vmem:[#allocation5 + $0x8d8] ss:$24 sps:$4 sm:$0xff]   ;;  %v2997_v45 = vld [vmem:[#allocation5 + $0x8ac] ss:$24 sps:$4 sm:$0xff]  }
  0x8d   :  { %1999 = vmatprep.subr.bf16.mxu1 %v2904_v46  ;;  %v2992_v46 = vld [vmem:[#allocation5 + $0x5a8] ss:$24 sps:$4 sm:$0xff]  }
  0x8f   :  { %1957 = vmatpush2.bf16.msra.mxu0 %v2899_v47  ;;  %v3000_v47 = vld [vmem:[#allocation5 + $0x57c] ss:$24 sps:$4 sm:$0xff]  }
  0x90   :  { %1958 = vmatprep.subr.bf16.mxu0 %v2907_v48  ;;  %2000 = vmatpush2.bf16.msra.mxu1 %v2902_v49  ;;  %v2995_v48 = vld [vmem:[#allocation5 + $0x8a8] ss:$24 sps:$4 sm:$0xff]   ;;  %v3003_v49 = vld [vmem:[#allocation5 + $0x87c] ss:$24 sps:$4 sm:$0xff]  }
  0x91   :  { %2001 = vmatprep.subr.bf16.mxu1 %v2910_v50  ;;  %v2998_v50 = vld [vmem:[#allocation5 + $0x578] ss:$24 sps:$4 sm:$0xff]  }
  0x93   :  { %1959 = vmatpush2.bf16.msra.mxu0 %v2905_v52  ;;  %v3006_v52 = vld [vmem:[#allocation5 + $0x54c] ss:$24 sps:$4 sm:$0xff]  }
  0x94   :  { %1960 = vmatprep.subr.bf16.mxu0 %v2913_v53  ;;  %2002 = vmatpush2.bf16.msra.mxu1 %v2908_v54  ;;  %v3001_v53 = vld [vmem:[#allocation5 + $0x878] ss:$24 sps:$4 sm:$0xff]   ;;  %v3009_v54 = vld [vmem:[#allocation5 + $0x84c] ss:$24 sps:$4 sm:$0xff]  }
  0x95   :  { %2003 = vmatprep.subr.bf16.mxu1 %v2916_v55  ;;  %v3004_v55 = vld [vmem:[#allocation5 + $0x548] ss:$24 sps:$4 sm:$0xff]  }
  0x97   :  { %1961 = vmatpush2.bf16.msra.mxu0 %v2911_v56  ;;  %v3012_v56 = vld [vmem:[#allocation5 + $0x51c] ss:$24 sps:$4 sm:$0xff]  }
  0x98   :  { %1962 = vmatprep.subr.bf16.mxu0 %v2919_v57  ;;  %2004 = vmatpush2.bf16.msra.mxu1 %v2914_v58  ;;  %v3007_v57 = vld [vmem:[#allocation5 + $0x848] ss:$24 sps:$4 sm:$0xff]   ;;  %v3015_v58 = vld [vmem:[#allocation5 + $0x81c] ss:$24 sps:$4 sm:$0xff]  }
  0x99   :  { %2005 = vmatprep.subr.bf16.mxu1 %v2922_v59  ;;  %v3010_v59 = vld [vmem:[#allocation5 + $0x518] ss:$24 sps:$4 sm:$0xff]  }
  0x9b   :  { %1963 = vmatpush2.bf16.msra.mxu0 %v2917_v60  ;;  %v3018_v60 = vld [vmem:[#allocation5 + $0x4ec] ss:$24 sps:$4 sm:$0xff]  }
  0x9c   :  { %1964 = vmatprep.subr.bf16.mxu0 %v2925_v61  ;;  %2006 = vmatpush2.bf16.msra.mxu1 %v2920_v62  ;;  %v3013_v61 = vld [vmem:[#allocation5 + $0x818] ss:$24 sps:$4 sm:$0xff]   ;;  %v3021_v62 = vld [vmem:[#allocation5 + $0x7ec] ss:$24 sps:$4 sm:$0xff]  }
  0x9d   :  { %2007 = vmatprep.subr.bf16.mxu1 %v2928_v63  ;;  %v3016_v63 = vld [vmem:[#allocation5 + $0x4e8] ss:$24 sps:$4 sm:$0xff]  }
  0x9f   :  { %1965 = vmatpush2.bf16.msra.mxu0 %v2923_v0  ;;  %v3024_v0 = vld [vmem:[#allocation5 + $0x4bc] ss:$24 sps:$4 sm:$0xff]  }
  0xa0   :  { %1966 = vmatprep.subr.bf16.mxu0 %v2931_v1  ;;  %2008 = vmatpush2.bf16.msra.mxu1 %v2926_v2  ;;  %v3019_v1 = vld [vmem:[#allocation5 + $0x7e8] ss:$24 sps:$4 sm:$0xff]   ;;  %v3027_v2 = vld [vmem:[#allocation5 + $0x7bc] ss:$24 sps:$4 sm:$0xff]  }
  0xa1   :  { %2009 = vmatprep.subr.bf16.mxu1 %v2934_v4  ;;  %v3022_v4 = vld [vmem:[#allocation5 + $0x4b8] ss:$24 sps:$4 sm:$0xff]  }
  0xa3   :  { %1967 = vmatpush2.bf16.msra.mxu0 %v2929_v5  ;;  %v3030_v5 = vld [vmem:[#allocation5 + $0x48c] ss:$24 sps:$4 sm:$0xff]  }
  0xa4   :  { %2022 = vmatprep.subr.bf16.mxu0 %v2940_v7  ;;  %2010 = vmatpush2.bf16.msra.mxu1 %v2932_v8  ;;  %v3025_v7 = vld [vmem:[#allocation5 + $0x7b8] ss:$24 sps:$4 sm:$0xff]   ;;  %v3033_v8 = vld [vmem:[#allocation5 + $0x78c] ss:$24 sps:$4 sm:$0xff]  }
  0xa5   :  { %2065 = vmatprep.subr.bf16.mxu1 %v2943_v10  ;;  %v3028_v10 = vld [vmem:[#allocation5 + $0x488] ss:$24 sps:$4 sm:$0xff]  }
  0xa6   :  { %1969 = vmatmul.mubr.bf16.vlgmr.msra.gmra.mxu0 %v3321_v9 }
  0xa7   :  { %2023 = vmatpush1.bf16.msra.mxu0 %v2938_v11  ;;  %2054 = vmatprep.mubr.bf16.mxu0 %v3309_v51  ;;  %v2956_v51 = vld [vmem:[#allocation5 + $0x3c8] ss:$24 sps:$4 sm:$0xff]   ;;  %v3036_v11 = vld [vmem:[#allocation5 + $0x164] ss:$24 sps:$4 sm:$0xff]  }
  0xa8   :  { %2012 = vmatmul.mubr.bf16.vlgmr.msra.gmra.mxu1 %v3312_v3  ;;  %2024 = vmatprep.subr.bf16.mxu0 %v2946_v12  ;;  %v2964_v3 = vld [vmem:[#allocation5 + $0x39c] ss:$24 sps:$4 sm:$0xff]   ;;  %v3031_v12 = vld [vmem:[#allocation5 + $0x788] ss:$24 sps:$4 sm:$0xff]  }
  0xa9   :  { %2066 = vmatpush1.bf16.msra.mxu1 %v2941_v13  ;;  %2097 = vmatprep.mubr.bf16.mxu1 %v3318_v33  ;;  %v3039_v13 = vld [vmem:[#allocation5 + $0x464] ss:$24 sps:$4 sm:$0xff]  }
  0xaa   :  { %2067 = vmatprep.subr.bf16.mxu1 %v2949_v14  ;;  %v3034_v14 = vld [vmem:[#allocation5 + $0x160] ss:$24 sps:$4 sm:$0xff]  }
  0xab   :  { %2025 = vmatpush1.bf16.msra.mxu0 %v2944_v15  ;;  %v3042_v15 = vld [vmem:[#allocation5 + $0x134] ss:$24 sps:$4 sm:$0xff]  }
  0xac   :  { %2026 = vmatprep.subr.bf16.mxu0 %v2952_v16  ;;  %v3037_v16 = vld [vmem:[#allocation5 + $0x460] ss:$24 sps:$4 sm:$0xff]  }
  0xad   :  { %2068 = vmatpush1.bf16.msra.mxu1 %v2947_v17  ;;  %v3045_v17 = vld [vmem:[#allocation5 + $0x434] ss:$24 sps:$4 sm:$0xff]  }
  0xae   :  { %2069 = vmatprep.subr.bf16.mxu1 %v2955_v18  ;;  %v3040_v18 = vld [vmem:[#allocation5 + $0x130] ss:$24 sps:$4 sm:$0xff]  }
  0xaf   :  { %2027 = vmatpush1.bf16.msra.mxu0 %v2950_v19  ;;  %v3182_v19 = vld [vmem:[#allocation2 + $0x4] ss:$24 sps:$4 sm:$0xff]  }
  0xb0   :  { %2028 = vmatprep.subr.bf16.mxu0 %v2958_v20  ;;  %v3048_v20 = vld [vmem:[#allocation5 + $0x104] ss:$24 sps:$4 sm:$0xff]  }
  0xb1   :  { %2070 = vmatpush1.bf16.msra.mxu1 %v2953_v21  ;;  %v3043_v21 = vld [vmem:[#allocation5 + $0x430] ss:$24 sps:$4 sm:$0xff]  }
  0xb2   :  { %2071 = vmatprep.subr.bf16.mxu1 %v2961_v22  ;;  %v3183_v22 = vld [vmem:[#allocation2 + $0xc] ss:$24 sps:$4 sm:$0xff]  }
  0xb3   :  { %2029 = vmatpush1.bf16.msra.mxu0 %v2956_v51  ;;  %v3051_v51 = vld [vmem:[#allocation5 + $0x404] ss:$24 sps:$4 sm:$0xff]  }
  0xb4   :  { %2030 = vmatprep.subr.bf16.mxu0 %v2964_v3  ;;  %v3046_v3 = vld [vmem:[#allocation5 + $0x100] ss:$24 sps:$4 sm:$0xff]  }
  0xb5   :  { %2072 = vmatpush1.bf16.msra.mxu1 %v2959_v23  ;;  %v3049_v23 = vld [vmem:[#allocation5 + $0x400] ss:$24 sps:$4 sm:$0xff]  }
  0xb6   :  { %2073 = vmatprep.subr.bf16.mxu1 %v2967_v24  ;;  %v3057_v24 = vld [vmem:[#allocation5 + $0x3d4] ss:$24 sps:$4 sm:$0xff]  }
  0xb7   :  { %2031 = vmatpush1.bf16.msra.mxu0 %v2962_v25  ;;  %v3052_v25 = vld [vmem:[#allocation5 + $0xd0] ss:$24 sps:$4 sm:$0xff]  }
  0xb8   :  { %2032 = vmatprep.subr.bf16.mxu0 %v2970_v26  ;;  %v3060_v26 = vld [vmem:[#allocation5 + $0xa4] ss:$24 sps:$4 sm:$0xff]  }
  0xb9   :  { %2074 = vmatpush1.bf16.msra.mxu1 %v2965_v27  ;;  %v3055_v27 = vld [vmem:[#allocation5 + $0x3d0] ss:$24 sps:$4 sm:$0xff]  }
  0xba   :  { %2075 = vmatprep.subr.bf16.mxu1 %v2973_v28  ;;  %v3063_v28 = vld [vmem:[#allocation5 + $0x3a4] ss:$24 sps:$4 sm:$0xff]  }
  0xbb   :  { %2033 = vmatpush1.bf16.msra.mxu0 %v2968_v29  ;;  %v3058_v29 = vld [vmem:[#allocation5 + $0xa0] ss:$24 sps:$4 sm:$0xff]  }
  0xbc   :  { %2034 = vmatprep.subr.bf16.mxu0 %v2976_v30  ;;  %v3066_v30 = vld [vmem:[#allocation5 + $0x74] ss:$24 sps:$4 sm:$0xff]  }
  0xbd   :  { %2076 = vmatpush1.bf16.msra.mxu1 %v2971_v31  ;;  %v3061_v31 = vld [vmem:[#allocation5 + $0x3a0] ss:$24 sps:$4 sm:$0xff]  }
  0xbe   :  { %2077 = vmatprep.subr.bf16.mxu1 %v2979_v32  ;;  %v3069_v32 = vld [vmem:[#allocation5 + $0x374] ss:$24 sps:$4 sm:$0xff]  }
  0xbf   :  { %2035 = vmatpush1.bf16.msra.mxu0 %v2974_v34  ;;  %v3064_v34 = vld [vmem:[#allocation5 + $0x70] ss:$24 sps:$4 sm:$0xff]  }
  0xc0   :  { %2036 = vmatprep.subr.bf16.mxu0 %v2982_v35  ;;  %v3072_v35 = vld [vmem:[#allocation5 + $0x44] ss:$24 sps:$4 sm:$0xff]  }
  0xc1   :  { %2078 = vmatpush1.bf16.msra.mxu1 %v2977_v36  ;;  %v3067_v36 = vld [vmem:[#allocation5 + $0x370] ss:$24 sps:$4 sm:$0xff]  }
  0xc2   :  { %2079 = vmatprep.subr.bf16.mxu1 %v2985_v37  ;;  %v3075_v37 = vld [vmem:[#allocation5 + $0x344] ss:$24 sps:$4 sm:$0xff]  }
  0xc3   :  { %2037 = vmatpush1.bf16.msra.mxu0 %v2980_v38  ;;  %v3070_v38 = vld [vmem:[#allocation5 + $0x40] ss:$24 sps:$4 sm:$0xff]  }
  0xc4   :  { %2038 = vmatprep.subr.bf16.mxu0 %v2988_v39  ;;  %v3078_v39 = vld [vmem:[#allocation5 + $0x14] ss:$24 sps:$4 sm:$0xff]  }
  0xc5   :  { %2080 = vmatpush1.bf16.msra.mxu1 %v2983_v40  ;;  %v3073_v40 = vld [vmem:[#allocation5 + $0x340] ss:$24 sps:$4 sm:$0xff]  }
  0xc6   :  { %2081 = vmatprep.subr.bf16.mxu1 %v2991_v41  ;;  %v3081_v41 = vld [vmem:[#allocation5 + $0x314] ss:$24 sps:$4 sm:$0xff]  }
  0xc7   :  { %2039 = vmatpush2.bf16.msra.mxu0 %v2986_v42  ;;  %v3076_v42 = vld [vmem:[#allocation5 + $0x10] ss:$24 sps:$4 sm:$0xff]  }
  0xc8   :  { %2040 = vmatprep.subr.bf16.mxu0 %v2994_v43  ;;  %v3084_v43 = vld [vmem:[#allocation5 + $0x2e4] ss:$24 sps:$4 sm:$0xff]  }
  0xc9   :  { %2082 = vmatpush2.bf16.msra.mxu1 %v2989_v44  ;;  %v3079_v44 = vld [vmem:[#allocation5 + $0x310] ss:$24 sps:$4 sm:$0xff]  }
  0xca   :  { %2083 = vmatprep.subr.bf16.mxu1 %v2997_v45  ;;  %v3087_v45 = vld [vmem:[#allocation5 + $0x5e4] ss:$24 sps:$4 sm:$0xff]  }
  0xcb   :  { %2041 = vmatpush2.bf16.msra.mxu0 %v2992_v46  ;;  %v3082_v46 = vld [vmem:[#allocation5 + $0x2e0] ss:$24 sps:$4 sm:$0xff]  }
  0xcc   :  { %2042 = vmatprep.subr.bf16.mxu0 %v3000_v47  ;;  %v3090_v47 = vld [vmem:[#allocation5 + $0x2b4] ss:$24 sps:$4 sm:$0xff]  }
  0xcd   :  { %2084 = vmatpush2.bf16.msra.mxu1 %v2995_v48  ;;  %v3085_v48 = vld [vmem:[#allocation5 + $0x5e0] ss:$24 sps:$4 sm:$0xff]  }
  0xce   :  { %2085 = vmatprep.subr.bf16.mxu1 %v3003_v49  ;;  %v3093_v49 = vld [vmem:[#allocation5 + $0x5b4] ss:$24 sps:$4 sm:$0xff]  }
  0xcf   :  { %2043 = vmatpush2.bf16.msra.mxu0 %v2998_v50  ;;  %v3088_v50 = vld [vmem:[#allocation5 + $0x2b0] ss:$24 sps:$4 sm:$0xff]  }
  0xd0   :  { %2044 = vmatprep.subr.bf16.mxu0 %v3006_v52  ;;  %v3096_v52 = vld [vmem:[#allocation5 + $0x284] ss:$24 sps:$4 sm:$0xff]  }
  0xd1   :  { %2086 = vmatpush2.bf16.msra.mxu1 %v3001_v53  ;;  %v3091_v53 = vld [vmem:[#allocation5 + $0x5b0] ss:$24 sps:$4 sm:$0xff]  }
  0xd2   :  { %2087 = vmatprep.subr.bf16.mxu1 %v3009_v54  ;;  %v3099_v54 = vld [vmem:[#allocation5 + $0x584] ss:$24 sps:$4 sm:$0xff]  }
  0xd3   :  { %2045 = vmatpush2.bf16.msra.mxu0 %v3004_v55  ;;  %v3094_v55 = vld [vmem:[#allocation5 + $0x280] ss:$24 sps:$4 sm:$0xff]  }
  0xd4   :  { %2046 = vmatprep.subr.bf16.mxu0 %v3012_v56  ;;  %v3102_v56 = vld [vmem:[#allocation5 + $0x254] ss:$24 sps:$4 sm:$0xff]  }
  0xd5   :  { %2088 = vmatpush2.bf16.msra.mxu1 %v3007_v57  ;;  %v3097_v57 = vld [vmem:[#allocation5 + $0x580] ss:$24 sps:$4 sm:$0xff]  }
  0xd6   :  { %2089 = vmatprep.subr.bf16.mxu1 %v3015_v58  ;;  %v3105_v58 = vld [vmem:[#allocation5 + $0x554] ss:$24 sps:$4 sm:$0xff]  }
  0xd7   :  { %2047 = vmatpush2.bf16.msra.mxu0 %v3010_v59  ;;  %v3100_v59 = vld [vmem:[#allocation5 + $0x250] ss:$24 sps:$4 sm:$0xff]  }
  0xd8   :  { %2048 = vmatprep.subr.bf16.mxu0 %v3018_v60  ;;  %v3108_v60 = vld [vmem:[#allocation5 + $0x224] ss:$24 sps:$4 sm:$0xff]  }
  0xd9   :  { %2090 = vmatpush2.bf16.msra.mxu1 %v3013_v61  ;;  %v3103_v61 = vld [vmem:[#allocation5 + $0x550] ss:$24 sps:$4 sm:$0xff]  }
  0xda   :  { %2091 = vmatprep.subr.bf16.mxu1 %v3021_v62  ;;  %v3111_v62 = vld [vmem:[#allocation5 + $0x524] ss:$24 sps:$4 sm:$0xff]  }
  0xdb   :  { %2049 = vmatpush2.bf16.msra.mxu0 %v3016_v63  ;;  %v3106_v63 = vld [vmem:[#allocation5 + $0x220] ss:$24 sps:$4 sm:$0xff]  }
  0xdc   :  { %2050 = vmatprep.subr.bf16.mxu0 %v3024_v0  ;;  %v3114_v0 = vld [vmem:[#allocation5 + $0x1f4] ss:$24 sps:$4 sm:$0xff]  }
  0xdd   :  { %2092 = vmatpush2.bf16.msra.mxu1 %v3019_v1  ;;  %v3109_v1 = vld [vmem:[#allocation5 + $0x520] ss:$24 sps:$4 sm:$0xff]  }
  0xde   :  { %2093 = vmatprep.subr.bf16.mxu1 %v3027_v2  ;;  %v3117_v2 = vld [vmem:[#allocation5 + $0x4f4] ss:$24 sps:$4 sm:$0xff]  }
  0xdf   :  { %2051 = vmatpush2.bf16.msra.mxu0 %v3022_v4  ;;  %v3112_v4 = vld [vmem:[#allocation5 + $0x1f0] ss:$24 sps:$4 sm:$0xff]  }
  0xe0   :  { %2052 = vmatprep.subr.bf16.mxu0 %v3030_v5  ;;  %v3120_v5 = vld [vmem:[#allocation5 + $0x1c4] ss:$24 sps:$4 sm:$0xff]  }
  0xe1   :  { %2094 = vmatpush2.bf16.msra.mxu1 %v3025_v7  ;;  %v3115_v7 = vld [vmem:[#allocation5 + $0x4f0] ss:$24 sps:$4 sm:$0xff]  }
  0xe2   :  { %2095 = vmatprep.subr.bf16.mxu1 %v3033_v8  ;;  %v3123_v8 = vld [vmem:[#allocation5 + $0x4c4] ss:$24 sps:$4 sm:$0xff]  }
  0xe3   :  { %2053 = vmatpush2.bf16.msra.mxu0 %v3028_v10  ;;  %v3118_v10 = vld [vmem:[#allocation5 + $0x1c0] ss:$24 sps:$4 sm:$0xff]  }
  0xe4   :  { %2108 = vmatprep.subr.bf16.mxu0 %v3036_v11  ;;  %v3126_v11 = vld [vmem:[#allocation5 + $0x194] ss:$24 sps:$4 sm:$0xff]  }
  0xe5   :  { %2096 = vmatpush2.bf16.msra.mxu1 %v3031_v12  ;;  %v3121_v12 = vld [vmem:[#allocation5 + $0x4c0] ss:$24 sps:$4 sm:$0xff]  }
  0xe6   :  { %2055 = vmatmul.mubr.bf16.vlgmr.msra.gmra.mxu0 %v3314_v6  ;;  %2151 = vmatprep.subr.bf16.mxu1 %v3039_v13  ;;  %v3054_v6 = vld [vmem:[#allocation5 + $0xd4] ss:$24 sps:$4 sm:$0xff]  }
  0xe7   :  { %2109 = vmatpush1.bf16.msra.mxu0 %v3034_v14  ;;  %2140 = vmatprep.mubr.bf16.mxu0 %v3182_v19  ;;  %v3129_v13 = vld [vmem:[#allocation5 + $0x494] ss:$24 sps:$4 sm:$0xff]   ;;  %v3124_v14 = vld [vmem:[#allocation5 + $0x190] ss:$24 sps:$4 sm:$0xff]  }
  0xe8   :  { %2098 = vmatmul.mubr.bf16.vlgmr.msra.gmra.mxu1 %v3321_v9  ;;  %2110 = vmatprep.subr.bf16.mxu0 %v3042_v15  ;;  %v3132_v15 = vld [vmem:[#allocation5 + $0x764] ss:$24 sps:$4 sm:$0xff]   ;;  %v3184_v19 = vld [vmem:[#allocation2] ss:$24 sps:$4 sm:$0xff]  }
  0xe9   :  { %2152 = vmatpush1.bf16.msra.mxu1 %v3037_v16  ;;  %2183 = vmatprep.mubr.bf16.mxu1 %v3183_v22  ;;  %v3127_v16 = vld [vmem:[#allocation5 + $0x490] ss:$24 sps:$4 sm:$0xff]   ;;  %v3138_v22 = vld [vmem:[#allocation5 + $0x704] ss:$24 sps:$4 sm:$0xff]  }
  0xea   :  { %2153 = vmatprep.subr.bf16.mxu1 %v3045_v17  ;;  %v3130_v17 = vld [vmem:[#allocation5 + $0x760] ss:$24 sps:$4 sm:$0xff]  }
  0xeb   :  { %2111 = vmatpush1.bf16.msra.mxu0 %v3040_v18  ;;  %v3135_v18 = vld [vmem:[#allocation5 + $0x734] ss:$24 sps:$4 sm:$0xff]  }
  0xec   :  { %2112 = vmatprep.subr.bf16.mxu0 %v3048_v20  ;;  %v3133_v20 = vld [vmem:[#allocation5 + $0x730] ss:$24 sps:$4 sm:$0xff]  }
  0xed   :  { %2154 = vmatpush1.bf16.msra.mxu1 %v3043_v21  ;;  %v3185_v21 = vld [vmem:[#allocation2 + $0x8] ss:$24 sps:$4 sm:$0xff]  }
  0xee   :  { %2155 = vmatprep.subr.bf16.mxu1 %v3051_v51  ;;  %v3136_v51 = vld [vmem:[#allocation5 + $0x700] ss:$24 sps:$4 sm:$0xff]  }
  0xef   :  { %2113 = vmatpush1.bf16.msra.mxu0 %v3046_v3  ;;  %v3141_v3 = vld [vmem:[#allocation5 + $0x6d4] ss:$24 sps:$4 sm:$0xff]  }
  0xf0   :  { %2114 = vmatprep.subr.bf16.mxu0 %v3054_v6  ;;  %v3139_v6 = vld [vmem:[#allocation5 + $0x6d0] ss:$24 sps:$4 sm:$0xff]  }
  0xf1   :  { %2156 = vmatpush1.bf16.msra.mxu1 %v3049_v23  ;;  %v3144_v23 = vld [vmem:[#allocation5 + $0x6a4] ss:$24 sps:$4 sm:$0xff]  }
  0xf2   :  { %2157 = vmatprep.subr.bf16.mxu1 %v3057_v24  ;;  %v3142_v24 = vld [vmem:[#allocation5 + $0x6a0] ss:$24 sps:$4 sm:$0xff]  }
  0xf3   :  { %2115 = vmatpush1.bf16.msra.mxu0 %v3052_v25  ;;  %v3147_v25 = vld [vmem:[#allocation5 + $0x674] ss:$24 sps:$4 sm:$0xff]  }
  0xf4   :  { %2116 = vmatprep.subr.bf16.mxu0 %v3060_v26  ;;  %v3145_v26 = vld [vmem:[#allocation5 + $0x670] ss:$24 sps:$4 sm:$0xff]  }
  0xf5   :  { %2158 = vmatpush1.bf16.msra.mxu1 %v3055_v27  ;;  %v3148_v27 = vld [vmem:[#allocation5 + $0x640] ss:$24 sps:$4 sm:$0xff]  }
  0xf6   :  { %2159 = vmatprep.subr.bf16.mxu1 %v3063_v28  ;;  %v3153_v28 = vld [vmem:[#allocation5 + $0x614] ss:$24 sps:$4 sm:$0xff]  }
  0xf7   :  { %2117 = vmatpush1.bf16.msra.mxu0 %v3058_v29  ;;  %v3151_v29 = vld [vmem:[#allocation5 + $0x610] ss:$24 sps:$4 sm:$0xff]  }
  0xf8   :  { %2118 = vmatprep.subr.bf16.mxu0 %v3066_v30  ;;  %v3156_v30 = vld [vmem:[#allocation5 + $0x8e4] ss:$24 sps:$4 sm:$0xff]  }
  0xf9   :  { %2160 = vmatpush1.bf16.msra.mxu1 %v3061_v31  ;;  %v3154_v31 = vld [vmem:[#allocation5 + $0x8e0] ss:$24 sps:$4 sm:$0xff]  }
  0xfa   :  { %2161 = vmatprep.subr.bf16.mxu1 %v3069_v32  ;;  %v3159_v32 = vld [vmem:[#allocation5 + $0x8b4] ss:$24 sps:$4 sm:$0xff]  }
  0xfb   :  { %2119 = vmatpush1.bf16.msra.mxu0 %v3064_v34  ;;  %v3157_v34 = vld [vmem:[#allocation5 + $0x8b0] ss:$24 sps:$4 sm:$0xff]  }
  0xfc   :  { %2120 = vmatprep.subr.bf16.mxu0 %v3072_v35  ;;  %v3162_v35 = vld [vmem:[#allocation5 + $0x884] ss:$24 sps:$4 sm:$0xff]  }
  0xfd   :  { %2162 = vmatpush1.bf16.msra.mxu1 %v3067_v36  ;;  %v3160_v36 = vld [vmem:[#allocation5 + $0x880] ss:$24 sps:$4 sm:$0xff]  }
  0xfe   :  { %2163 = vmatprep.subr.bf16.mxu1 %v3075_v37  ;;  %v3165_v37 = vld [vmem:[#allocation5 + $0x854] ss:$24 sps:$4 sm:$0xff]  }
  0xff   :  { %2121 = vmatpush1.bf16.msra.mxu0 %v3070_v38  ;;  %v3163_v38 = vld [vmem:[#allocation5 + $0x850] ss:$24 sps:$4 sm:$0xff]  }
 0x100   :  { %2122 = vmatprep.subr.bf16.mxu0 %v3078_v39  ;;  %v3168_v39 = vld [vmem:[#allocation5 + $0x824] ss:$24 sps:$4 sm:$0xff]  }
 0x101   :  { %2164 = vmatpush1.bf16.msra.mxu1 %v3073_v40  ;;  %v3166_v40 = vld [vmem:[#allocation5 + $0x820] ss:$24 sps:$4 sm:$0xff]  }
 0x102   :  { %2165 = vmatprep.subr.bf16.mxu1 %v3081_v41  ;;  %v3171_v41 = vld [vmem:[#allocation5 + $0x7f4] ss:$24 sps:$4 sm:$0xff]  }
 0x103   :  { %2123 = vmatpush1.bf16.msra.mxu0 %v3076_v42  ;;  %v3169_v42 = vld [vmem:[#allocation5 + $0x7f0] ss:$24 sps:$4 sm:$0xff]  }
 0x104   :  { %2124 = vmatprep.subr.bf16.mxu0 %v3084_v43  ;;  %v3174_v43 = vld [vmem:[#allocation5 + $0x7c4] ss:$24 sps:$4 sm:$0xff]  }
 0x105   :  { %2166 = vmatpush1.bf16.msra.mxu1 %v3079_v44  ;;  %v3172_v44 = vld [vmem:[#allocation5 + $0x7c0] ss:$24 sps:$4 sm:$0xff]  }
 0x106   :  { %2167 = vmatprep.subr.bf16.mxu1 %v3087_v45  ;;  %v3177_v45 = vld [vmem:[#allocation5 + $0x794] ss:$24 sps:$4 sm:$0xff]  }
 0x107   :  { %2125 = vmatpush2.bf16.msra.mxu0 %v3082_v46  ;;  %v3175_v46 = vld [vmem:[#allocation5 + $0x790] ss:$24 sps:$4 sm:$0xff]  }
 0x108   :  { %2126 = vmatprep.subr.bf16.mxu0 %v3090_v47 }
 0x109   :  { %2168 = vmatpush2.bf16.msra.mxu1 %v3085_v48 }
 0x10a   :  { %2169 = vmatprep.subr.bf16.mxu1 %v3093_v49 }
 0x10b   :  { %2127 = vmatpush2.bf16.msra.mxu0 %v3088_v50 }
 0x10c   :  { %2128 = vmatprep.subr.bf16.mxu0 %v3096_v52 }
 0x10d   :  { %2170 = vmatpush2.bf16.msra.mxu1 %v3091_v53 }
 0x10e   :  { %2171 = vmatprep.subr.bf16.mxu1 %v3099_v54 }
 0x10f   :  { %2129 = vmatpush2.bf16.msra.mxu0 %v3094_v55 }
 0x110   :  { %2130 = vmatprep.subr.bf16.mxu0 %v3102_v56 }
 0x111   :  { %2172 = vmatpush2.bf16.msra.mxu1 %v3097_v57 }
 0x112   :  { %2173 = vmatprep.subr.bf16.mxu1 %v3105_v58 }
 0x113   :  { %2131 = vmatpush2.bf16.msra.mxu0 %v3100_v59 }
 0x114   :  { %2132 = vmatprep.subr.bf16.mxu0 %v3108_v60 }
 0x115   :  { %2174 = vmatpush2.bf16.msra.mxu1 %v3103_v61  ;;  %v350_v61 = vlaneseq }
 0x116   :  { %2175 = vmatprep.subr.bf16.mxu1 %v3111_v62 }
 0x117   :  { %2133 = vmatpush2.bf16.msra.mxu0 %v3106_v63 }
 0x118   :  { %2134 = vmatprep.subr.bf16.mxu0 %v3114_v0  ;;  %v351_v0 = vshrl.u32 %v350_v61, 7 }
 0x119   :  { %2176 = vmatpush2.bf16.msra.mxu1 %v3109_v1 }
 0x11a   :  { %2177 = vmatprep.subr.bf16.mxu1 %v3117_v2 }
 0x11b   :  { %2135 = vmatpush2.bf16.msra.mxu0 %v3112_v4  ;;  %v3333_v4 = vsub.s32 2, %v351_v0 }
 0x11c   :  { %2136 = vmatprep.subr.bf16.mxu0 %v3120_v5  ;;  %v348_v5 = vld [vmem:[#allocation7] ss:$4 sm:$0x3f] }
 0x11d   :  { %2178 = vmatpush2.bf16.msra.mxu1 %v3115_v7  ;;  %v3335_v7 = vsub.s32 0, %v351_v0 }
 0x11e   :  { %2179 = vmatprep.subr.bf16.mxu1 %v3123_v8 }
 0x11f   :  { %2137 = vmatpush2.bf16.msra.mxu0 %v3118_v10 }
 0x120   :  { %2138 = vmatprep.subr.bf16.mxu0 %v3126_v11 }
 0x121   :  { %2180 = vmatpush2.bf16.msra.mxu1 %v3121_v12  ;;  %v361_v12 = vrot.slane %v348_v5, %v3333_v4 }
 0x122   :  { %2181 = vmatprep.subr.bf16.mxu1 %v3129_v13  ;;  %v3339_v13 = vsub.s32 3, %v351_v0 }
 0x123   :  { %2139 = vmatpush2.bf16.msra.mxu0 %v3124_v14  ;;  %v353_v14 = vrot.slane %v348_v5, %v3335_v7 }
 0x124   :  { %2194 = vmatprep.subr.bf16.mxu0 %v3132_v15 }
 0x125   :  { %2182 = vmatpush2.bf16.msra.mxu1 %v3127_v16 }
 0x126   :  { %2141 = vmatmul.mubr.bf16.vlgmr.msra.gmra.mxu0 %v3184_v19  ;;  %v1884_v47 = vpop.f32.mrf.mxu0  ;;  %v365_v19 = vrot.slane %v348_v5, %v3339_v13 }
 0x127   :  { %2195 = vmatpush1.bf16.msra.mxu0 %v3130_v17  ;;  %2226 = vmatprep.mubr.bf16.mxu0 %v3318_v33  ;;  %v3150_v33 = vld [vmem:[#allocation5 + $0x644] ss:$24 sps:$4 sm:$0xff]   ;;  %v1927_v48 = vpop.f32.mrf.mxu1 }
 0x128   :  { %2184 = vmatmul.mubr.bf16.vlgmr.msra.gmra.mxu1 %v3185_v21  ;;  %2196 = vmatprep.subr.bf16.mxu0 %v3135_v18  ;;  %v1886_v49 = vpop.f32.mrf.mxu0 }
 0x129   :  { %v1929_v50 = vpop.f32.mrf.mxu1 }
 0x12a   :  { %v1888_v52 = vpop.f32.mrf.mxu0 }
 0x12b   :  { %2197 = vmatpush1.bf16.msra.mxu0 %v3133_v20  ;;  %v1931_v53 = vpop.f32.mrf.mxu1  ;;  %v1885_v20 = vadd.f32 %v1884_v47, %v353_v14 }
 0x12c   :  { %2198 = vmatprep.subr.bf16.mxu0 %v3138_v22  ;;  %v1890_v54 = vpop.f32.mrf.mxu0 }
 0x12d   :  { %v1933_v55 = vpop.f32.mrf.mxu1 }
 0x12f   :  { %2199 = vmatpush1.bf16.msra.mxu0 %v3136_v51 }
 0x130   :  { %2200 = vmatprep.subr.bf16.mxu0 %v3141_v3 }
 0x133   :  { %2201 = vmatpush1.bf16.msra.mxu0 %v3139_v6 }
 0x134   :  { %2202 = vmatprep.subr.bf16.mxu0 %v3144_v23 }
 0x137   :  { %2203 = vmatpush1.bf16.msra.mxu0 %v3142_v24 }
 0x138   :  { %2204 = vmatprep.subr.bf16.mxu0 %v3147_v25  ;;  %v1928_v25 = vadd.f32 %v1927_v48, %v1885_v20 }
 0x13b   :  { %2205 = vmatpush1.bf16.msra.mxu0 %v3145_v26  ;;  %v1889_v26 = vadd.f32 %v1888_v52, %v353_v14 }
 0x13c   :  { %2206 = vmatprep.subr.bf16.mxu0 %v3150_v33 }
 0x13f   :  { %2207 = vmatpush1.bf16.msra.mxu0 %v3148_v27  ;;  %v3343_v27 = vsub.s32 4, %v351_v0 }
 0x140   :  { %2208 = vmatprep.subr.bf16.mxu0 %v3153_v28 }
 0x143   :  { %2209 = vmatpush1.bf16.msra.mxu0 %v3151_v29 }
 0x144   :  { %2210 = vmatprep.subr.bf16.mxu0 %v3156_v30 }
 0x147   :  { %2211 = vmatpush2.bf16.msra.mxu0 %v3154_v31  ;;  %v3349_v31 = vsub.s32 5, %v351_v0 }
 0x148   :  { %2212 = vmatprep.subr.bf16.mxu0 %v3159_v32 }
 0x14b   :  { %2213 = vmatpush2.bf16.msra.mxu0 %v3157_v34 }
 0x14c   :  { %2214 = vmatprep.subr.bf16.mxu0 %v3162_v35 }
 0x14f   :  { %2215 = vmatpush2.bf16.msra.mxu0 %v3160_v36 }
 0x150   :  { %2216 = vmatprep.subr.bf16.mxu0 %v3165_v37 }
 0x153   :  { %2217 = vmatpush2.bf16.msra.mxu0 %v3163_v38 }
 0x154   :  { %2218 = vmatprep.subr.bf16.mxu0 %v3168_v39  ;;  %v1932_v39 = vadd.f32 %v1931_v53, %v1889_v26 }
 0x157   :  { %2219 = vmatpush2.bf16.msra.mxu0 %v3166_v40  ;;  %v369_v40 = vrot.slane %v348_v5, %v3343_v27 }
 0x158   :  { %2220 = vmatprep.subr.bf16.mxu0 %v3171_v41 }
 0x15b   :  { %2221 = vmatpush2.bf16.msra.mxu0 %v3169_v42 }
 0x15c   :  { %2222 = vmatprep.subr.bf16.mxu0 %v3174_v43 }
 0x15f   :  { %2223 = vmatpush2.bf16.msra.mxu0 %v3172_v44 }
 0x160   :  { %2224 = vmatprep.subr.bf16.mxu0 %v3177_v45 }
 0x163   :  { %2225 = vmatpush2.bf16.msra.mxu0 %v3175_v46  ;;  %v373_v46 = vrot.slane %v348_v5, %v3349_v31 }
 0x166   :  { %2227 = vmatmul.mubr.bf16.vlgmr.msra.gmra.mxu0 %v3321_v9  ;;  %v1970_v56 = vpop.f32.mrf.mxu0  ;;  %v3331_v9 = vsub.s32 1, %v351_v0 }
 0x167   :  { %v3347_v30 = vadd.f32 %v1970_v56, %v1928_v25 }
 0x168   :  { %v2013_v57 = vpop.f32.mrf.mxu1  ;;  %v1972_v58 = vpop.f32.mrf.mxu0  ;;  %v357_v11 = vrot.slane %v348_v5, %v3331_v9 }
 0x169   :  { %v2014_v18 = vadd.f32 %v2013_v57, %v361_v12  ;;  %v2253_v44 = vmul.f32 %v3347_v30, %v3347_v30 }
 0x16a   :  { %v2015_v59 = vpop.f32.mrf.mxu1  ;;  %v1974_v60 = vpop.f32.mrf.mxu0  ;;  %v1887_v17 = vadd.f32 %v1886_v49, %v357_v11  ;;  %v1891_v6 = vadd.f32 %v1890_v54, %v357_v11 }
 0x16b   :  { %v2016_v23 = vadd.f32 %v2015_v59, %v365_v19  ;;  %v3360_v45 = vadd.f32 %v1974_v60, %v1932_v39 }
 0x16c   :  { %v2017_v62 = vpop.f32.mrf.mxu1  ;;  %v1976_v63 = vpop.f32.mrf.mxu0  ;;  %v1930_v3 = vadd.f32 %v1929_v50, %v1887_v17  ;;  %v1934_v35 = vadd.f32 %v1933_v55, %v1891_v6 }
 0x16d   :  { %v2018_v29 = vadd.f32 %v2017_v62, %v361_v12 }
 0x16e   :  { %v2019_v1 = vpop.f32.mrf.mxu1  ;;  %v3345_v28 = vadd.f32 %v1972_v58, %v1930_v3  ;;  %v3356_v42 = vadd.f32 %v1976_v63, %v1934_v35  ;;  %v2259_v58 = vmul.f32 %v3360_v45, %v3360_v45 }
 0x16f   :  { %v2020_v43 = vadd.f32 %v2019_v1, %v365_v19 }
 0x170   :  { %v2254_v41 = vmul.f32 %v3345_v28, %v3345_v28  ;;  %v2237_v54 = vadd.f32 %v3345_v28, %v3347_v30  ;;  %v2260_v57 = vmul.f32 %v3356_v42, %v3356_v42  ;;  %v2244_v59 = vadd.f32 %v3356_v42, %v3360_v45 }
 0x172   :  { %v2265_v56 = vadd.f32 %v2254_v41, %v2253_v44  ;;  %v2272_v11 = vadd.f32 %v2260_v57, %v2259_v58 }
 0x1a6   :  { %v2056_v2 = vpop.f32.mrf.mxu0 }
 0x1a7   :  { %v2057_v24 = vadd.f32 %v2056_v2, %v2014_v18 }
 0x1a8   :  { %v2058_v8 = vpop.f32.mrf.mxu0  ;;  %v2099_v10 = vpop.f32.mrf.mxu1 }
 0x1a9   :  { %v2059_v36 = vadd.f32 %v2058_v8, %v2016_v23  ;;  %v3351_v37 = vadd.f32 %v2099_v10, %v2057_v24 }
 0x1aa   :  { %v2060_v15 = vpop.f32.mrf.mxu0  ;;  %v2101_v16 = vpop.f32.mrf.mxu1 }
 0x1ab   :  { %v2061_v38 = vadd.f32 %v2060_v15, %v2018_v29  ;;  %v2255_v49 = vmul.f32 %v3351_v37, %v3351_v37  ;;  %v3365_v50 = vadd.f32 %v2101_v16, %v2059_v36  ;;  %v2238_v60 = vadd.f32 %v2237_v54, %v3351_v37 }
 0x1ac   :  { %v2062_v21 = vpop.f32.mrf.mxu0  ;;  %v2103_v22 = vpop.f32.mrf.mxu1 }
 0x1ad   :  { %v2063_v52 = vadd.f32 %v2062_v21, %v2020_v43  ;;  %v3367_v53 = vadd.f32 %v2103_v22, %v2061_v38  ;;  %v2256_v0 = vmul.f32 %v3365_v50, %v3365_v50  ;;  %v2266_v5 = vadd.f32 %v2265_v56, %v2255_v49 }
 0x1ae   :  { %v2105_v33 = vpop.f32.mrf.mxu1  ;;  %v2239_v19 = vadd.f32 %v2238_v60, %v3365_v50 }
 0x1af   :  { %v2261_v1 = vmul.f32 %v3367_v53, %v3367_v53  ;;  %v3382_v2 = vadd.f32 %v2105_v33, %v2063_v52  ;;  %v2245_v12 = vadd.f32 %v2244_v59, %v3367_v53 }
 0x1b1   :  { %v2273_v20 = vadd.f32 %v2272_v11, %v2261_v1  ;;  %v2262_v21 = vmul.f32 %v3382_v2, %v3382_v2  ;;  %v2246_v25 = vadd.f32 %v2245_v12, %v3382_v2  ;;  %v2361_v11 = vld [vmem:[#allocation7 + $0x2] ss:$4 sm:$0x3f] }
 0x1b3   :  { %v2274_v38 = vadd.f32 %v2273_v20, %v2262_v21  ;;  %v2378_v21 = vrot.slane %v2361_v11, %v3339_v13 }
 0x1e6   :  { %v2142_v51 = vpop.f32.mrf.mxu0 }
 0x1e7   :  { %v2143_v55 = vadd.f32 %v2142_v51, %v369_v40  ;;  %v2267_v51 = vadd.f32 %v2266_v5, %v2256_v0 }
 0x1e8   :  { %v2144_v32 = vpop.f32.mrf.mxu0  ;;  %v2185_v34 = vpop.f32.mrf.mxu1 }
 0x1e9   :  { %v2145_v61 = vadd.f32 %v2144_v32, %v373_v46  ;;  %v2186_v8 = vadd.f32 %v2185_v34, %v2143_v55 }
 0x1ea   :  { %v2146_v47 = vpop.f32.mrf.mxu0  ;;  %v2187_v48 = vpop.f32.mrf.mxu1 }
 0x1eb   :  { %v2147_v10 = vadd.f32 %v2146_v47, %v369_v40  ;;  %v2188_v16 = vadd.f32 %v2187_v48, %v2145_v61 }
 0x1ec   :  { %v2148_v62 = vpop.f32.mrf.mxu0  ;;  %v2189_v63 = vpop.f32.mrf.mxu1 }
 0x1ed   :  { %v2149_v14 = vadd.f32 %v2148_v62, %v373_v46  ;;  %v2190_v3 = vadd.f32 %v2189_v63, %v2147_v10  ;;  %v2316_v10 = vld [vmem:[#allocation7 + $0x1] ss:$4 sm:$0x3f] }
 0x1ee   :  { %v2191_v17 = vpop.f32.mrf.mxu1  ;;  %v2321_v12 = vrot.slane %v2316_v10, %v3335_v7  ;;  %v2333_v20 = vrot.slane %v2316_v10, %v3339_v13 }
 0x1ef   :  { %v2192_v26 = vadd.f32 %v2191_v17, %v2149_v14  ;;  %v3411_v14 = vrot.slane %v2361_v11, %v3335_v7  ;;  %v2329_v17 = vrot.slane %v2316_v10, %v3333_v4  ;;  %v2386_v7 = vrot.slane %v2361_v11, %v3349_v31 }
 0x226   :  { %v2228_v15 = vpop.f32.mrf.mxu0 }
 0x227   :  { %v3385_v18 = vadd.f32 %v2228_v15, %v2186_v8  ;;  %v2325_v15 = vrot.slane %v2316_v10, %v3331_v9 }
 0x228   :  { %v2230_v22 = vpop.f32.mrf.mxu0 }
 0x229   :  { %v3390_v6 = vadd.f32 %v2230_v22, %v2188_v16  ;;  %v2240_v23 = vadd.f32 %v2239_v19, %v3385_v18  ;;  %v2257_v24 = vmul.f32 %v3385_v18, %v3385_v18  ;;  %v2370_v16 = vrot.slane %v2361_v11, %v3331_v9 }
 0x22a   :  { %v2232_v33 = vpop.f32.mrf.mxu0  ;;  %v2374_v19 = vrot.slane %v2361_v11, %v3333_v4  ;;  %v2337_v22 = vrot.slane %v2316_v10, %v3343_v27 }
 0x22b   :  { %v3396_v29 = vadd.f32 %v2232_v33, %v2190_v3  ;;  %v2241_v32 = vadd.f32 %v2240_v23, %v3390_v6  ;;  %v2258_v34 = vmul.f32 %v3390_v6, %v3390_v6  ;;  %v2268_v35 = vadd.f32 %v2267_v51, %v2257_v24 }
 0x22c   :  { %v2234_v36 = vpop.f32.mrf.mxu0  ;;  %v2382_v51 = vrot.slane %v2361_v11, %v3343_v27  ;;  %v2341_v3 = vrot.slane %v2316_v10, %v3349_v31 }
 0x22d   :  { %v2263_v39 = vmul.f32 %v3396_v29, %v3396_v29  ;;  %v3403_v40 = vadd.f32 %v2234_v36, %v2192_v26  ;;  %2242 = vadd.xlane.f32.xlu0 %v2241_v32  ;;  %v2269_v41 = vadd.f32 %v2268_v35, %v2258_v34  ;;  %v2247_v43 = vadd.f32 %v2246_v25, %v3396_v29 }
 0x22f   :  { %2270 = vadd.xlane.f32.xlu1 %v2269_v41  ;;  %v2248_v44 = vadd.f32 %v2247_v43, %v3403_v40  ;;  %v2264_v46 = vmul.f32 %v3403_v40, %v3403_v40  ;;  %v2275_v47 = vadd.f32 %v2274_v38, %v2263_v39 }
 0x231   :  { %2249 = vadd.xlane.f32.xlu0 %v2248_v44  ;;  %v2276_v48 = vadd.f32 %v2275_v47, %v2264_v46 }
 0x233   :  { %2277 = vadd.xlane.f32.xlu1 %v2276_v48 }
 0x2b6   :  { %v2243_v49 = vpop.xlane.xlu0 %2242 }
 0x2b7   :  { %v2251_v52 = vmul.f32 0.0013020834, %v2243_v49 }
 0x2b8   :  { %v2271_v54 = vpop.xlane.xlu1 %2270 }
 0x2b9   :  { %v2279_v55 = vmul.f32 0.0013020834, %v2271_v54  ;;  %v2281_v56 = vmul.f32 %v2251_v52, %v2251_v52  ;;  %v2287_v23 = vsub.f32 %v3347_v30, %v2251_v52  ;;  %v2288_v9 = vsub.f32 %v3345_v28, %v2251_v52 }
 0x2ba   :  { %v2250_v57 = vpop.xlane.xlu0 %2249  ;;  %v2289_v24 = vsub.f32 %v3351_v37, %v2251_v52  ;;  %v2290_v4 = vsub.f32 %v3365_v50, %v2251_v52  ;;  %v2291_v26 = vsub.f32 %v3385_v18, %v2251_v52  ;;  %v2292_v13 = vsub.f32 %v3390_v6, %v2251_v52 }
 0x2bb   :  { %v2252_v58 = vmul.f32 0.0013020834, %v2250_v57  ;;  %v2283_v59 = vsub.f32 %v2279_v55, %v2281_v56 }
 0x2bc   :  { %v2278_v60 = vpop.xlane.xlu1 %2277 }
 0x2bd   :  { %v2285_v61 = vmax.f32 %v2283_v59, 0.0  ;;  %v2280_v62 = vmul.f32 0.0013020834, %v2278_v60  ;;  %v2282_v63 = vmul.f32 %v2252_v58, %v2252_v58  ;;  %v2293_v33 = vsub.f32 %v3360_v45, %v2252_v58 }
 0x2be   :  { %v2294_v27 = vsub.f32 %v3356_v42, %v2252_v58  ;;  %v2295_v30 = vsub.f32 %v3367_v53, %v2252_v58  ;;  %v2296_v28 = vsub.f32 %v3382_v2, %v2252_v58  ;;  %v2297_v6 = vsub.f32 %v3396_v29, %v2252_v58 }
 0x2bf   :  { %v2299_v0 = vadd.f32 1e-05, %v2285_v61  ;;  %v2284_v1 = vsub.f32 %v2280_v62, %v2282_v63  ;;  %v2298_v45 = vsub.f32 %v3403_v40, %v2252_v58 }
 0x2c1   :  { %3178 = vrsqrt.f32 %v2299_v0  ;;  %v2286_v5 = vmax.f32 %v2284_v1, 0.0 }
 0x2c3   :  { %v2300_v8 = vadd.f32 1e-05, %v2286_v5 }
 0x2c5   :  { %3180 = vrsqrt.f32 %v2300_v8 }
 0x2ce   :  { %v3179_v25 = vpop.eup %3178 }
 0x2cf   :  { %v2303_v32 = vmul.f32 %v3179_v25, %v2287_v23  ;;  %v2304_v34 = vmul.f32 %v3179_v25, %v2288_v9  ;;  %v2305_v31 = vmul.f32 %v3179_v25, %v2289_v24  ;;  %v2306_v35 = vmul.f32 %v3179_v25, %v2290_v4 }
 0x2d0   :  { %v2307_v37 = vmul.f32 %v3179_v25, %v2291_v26  ;;  %v2308_v36 = vmul.f32 %v3179_v25, %v2292_v13 }
 0x2d1   :  { %v2348_v50 = vmul.f32 %v2321_v12, %v2303_v32  ;;  %v2349_v38 = vmul.f32 %v2325_v15, %v2304_v34  ;;  %v2350_v39 = vmul.f32 %v2329_v17, %v2305_v31  ;;  %v2351_v18 = vmul.f32 %v2333_v20, %v2306_v35 }
 0x2d2   :  { %v2352_v41 = vmul.f32 %v2337_v22, %v2307_v37  ;;  %v2353_v42 = vmul.f32 %v2341_v3, %v2308_v36  ;;  %v3181_v43 = vpop.eup %3180 }
 0x2d3   :  { %v2393_v44 = vadd.f32 %v3411_v14, %v2348_v50  ;;  %v2394_v46 = vadd.f32 %v2370_v16, %v2349_v38  ;;  %v2395_v47 = vadd.f32 %v2374_v19, %v2350_v39  ;;  %v2396_v53 = vadd.f32 %v2378_v21, %v2351_v18 }
 0x2d4   :  { %v2309_v48 = vmul.f32 %v3181_v43, %v2293_v33  ;;  %v2310_v2 = vmul.f32 %v3181_v43, %v2294_v27  ;;  %v2311_v49 = vmul.f32 %v3181_v43, %v2295_v30  ;;  %v2312_v52 = vmul.f32 %v3181_v43, %v2296_v28 }
 0x2d5   :  { %v2313_v54 = vmul.f32 %v3181_v43, %v2297_v6  ;;  %v2314_v55 = vmul.f32 %v3181_v43, %v2298_v45  ;;  %v2397_v56 = vadd.f32 %v2382_v51, %v2352_v41  ;;  %v2398_v57 = vadd.f32 %v2386_v7, %v2353_v42  ;;  %2405 = vst [vmem:[#allocation8] sm:$0xff] %v2393_v44 }
 0x2d6   :  { %2406 = vst [vmem:[#allocation8 + $0x8] sm:$0xff] %v2394_v46  ;;  %2407 = vst [vmem:[#allocation8 + $0x10] sm:$0xff] %v2395_v47  ;;  %v2354_v29 = vmul.f32 %v2321_v12, %v2309_v48  ;;  %v2355_v40 = vmul.f32 %v2325_v15, %v2310_v2  ;;  %v2356_v58 = vmul.f32 %v2329_v17, %v2311_v49 }
 0x2d7   :  { %2408 = vst [vmem:[#allocation8 + $0x18] sm:$0xff] %v2396_v53  ;;  %v2357_v59 = vmul.f32 %v2333_v20, %v2312_v52  ;;  %v2358_v60 = vmul.f32 %v2337_v22, %v2313_v54  ;;  %v2359_v61 = vmul.f32 %v2341_v3, %v2314_v55  ;;  %2409 = vst [vmem:[#allocation8 + $0x20] sm:$0xff] %v2397_v56 }
 0x2d8   :  { %2410 = vst [vmem:[#allocation8 + $0x28] sm:$0xff] %v2398_v57  ;;  %v2399_v62 = vadd.f32 %v3411_v14, %v2354_v29  ;;  %v2400_v63 = vadd.f32 %v2370_v16, %v2355_v40  ;;  %v2401_v0 = vadd.f32 %v2374_v19, %v2356_v58 }
 0x2d9   :  { %v2402_v1 = vadd.f32 %v2378_v21, %v2357_v59  ;;  %v2403_v5 = vadd.f32 %v2382_v51, %v2358_v60  ;;  %v2404_v8 = vadd.f32 %v2386_v7, %v2359_v61 }
 0x2da   :  { %2411 = vst [vmem:[#allocation8 + $0x30] sm:$0xff] %v2399_v62  ;;  %2412 = vst [vmem:[#allocation8 + $0x38] sm:$0xff] %v2400_v63 }
 0x2db   :  { %2413 = vst [vmem:[#allocation8 + $0x40] sm:$0xff] %v2401_v0  ;;  %2414 = vst [vmem:[#allocation8 + $0x48] sm:$0xff] %v2402_v1 }
 0x2dc   :  { %2415 = vst [vmem:[#allocation8 + $0x50] sm:$0xff] %v2403_v5  ;;  %2416 = vst [vmem:[#allocation8 + $0x58] sm:$0xff] %v2404_v8 }
 0x2dd   :  { %3257 = shalt.err (!%p3254_p5)
}
 0x2de   :  { %s3278_s29 = smov 768   ;;  %s3279_s30 = smov 48  }
 0x2df   :  { %2428 = dma.vmem_to_hbm [thread:$0]  %s2423_s2, 1536, %s3443_s3, [#allocation4], %s3278_s29, %s3278_s29, %s3279_s30  }
 0x2e0   :  { %3270 = dma.done.wait [#allocation4], 1536  }
 0x2e1   :  { %3271 = vsyncadd [#allocation4], 4294965760 }
 0x2e2   :  { %2432 = vsyncpa [#allocation3], 1 }
 0x2e3   :  { %2433 = vsyncpa [#allocation6], 1 }
 0x2e4   :  { %2434 = vsyncpa [#allocation4], 1 }

</bundles_post_ra>
